<compile_context>
chip_gen: v5e
topology: v5e:2x2
jax: 0.10.0
libtpu: 0.0.40
codegen_flags: <defaults>
</compile_context>

<pallas_src>
import functools
import math

import jax
import jax.numpy as jnp
from jax.experimental import pallas as pl
from jax.experimental.pallas import tpu as pltpu


COMPUTE_DTYPE = jnp.bfloat16          # MXU-friendly activation/weight dtype
VMEM_LIMIT = 48 * 1024 * 1024         # explicit scoped-VMEM budget (fits v7x's 64 MiB)


def _pick_tile(dim, targets):
    """Largest target tile that evenly divides `dim`; else the full dim."""
    for t in targets:
        if t <= dim and dim % t == 0:
            return t
    return dim


# ----------------------------------------------------------------------------
# Pallas kernels
# ----------------------------------------------------------------------------
def _ln_linear_kernel(x_ref, g_ref, b_ref, w_ref, bias_ref, o_ref, *, activation):
    """o = act(LayerNorm(x) @ w + bias).

    x:(tm, K)  g/b:(1, K)  w:(K, tn)  bias:(1, tn)  o:(tm, tn).
    K (= n_embd) is kept whole so the LN reduction stays in-tile; grid tiles M, N.
    """
    x = x_ref[...].astype(jnp.float32)
    mean = jnp.mean(x, axis=-1, keepdims=True)
    var = jnp.mean((x - mean) ** 2, axis=-1, keepdims=True)
    inv = jax.lax.rsqrt(var + 1e-5)
    h = (x - mean) * inv * g_ref[...].astype(jnp.float32) + b_ref[...].astype(jnp.float32)
    acc = jnp.dot(h.astype(w_ref.dtype), w_ref[...],
                  preferred_element_type=jnp.float32)
    acc = acc + bias_ref[...].astype(jnp.float32)
    if activation == "gelu":
        # GPT MLP non-linearity (tanh-approx GELU, as in minGPT's NewGELU), f32.
        acc = jax.nn.gelu(acc, approximate=True)
    o_ref[...] = acc.astype(o_ref.dtype)


def pallas_ln_linear(x, gamma, beta, w, bias, activation="none"):
    M, K = x.shape
    K2, N = w.shape
    assert K == K2
    tm = _pick_tile(M, (512, 256, 128))
    tn = _pick_tile(N, (512, 256, 128))
    grid = (M // tm, N // tn)
    return pl.pallas_call(
        functools.partial(_ln_linear_kernel, activation=activation),
        out_shape=jax.ShapeDtypeStruct((M, N), x.dtype),
        grid=grid,
        in_specs=[
            pl.BlockSpec((tm, K), lambda i, j: (i, 0)),
            pl.BlockSpec((1, K), lambda i, j: (0, 0)),
            pl.BlockSpec((1, K), lambda i, j: (0, 0)),
            pl.BlockSpec((K, tn), lambda i, j: (0, j)),
            pl.BlockSpec((1, tn), lambda i, j: (0, j)),
        ],
        out_specs=pl.BlockSpec((tm, tn), lambda i, j: (i, j)),
        compiler_params=pltpu.CompilerParams(
            dimension_semantics=("parallel", "parallel"),
            vmem_limit_bytes=VMEM_LIMIT),
    )(x, gamma.reshape(1, K), beta.reshape(1, K), w, bias.reshape(1, N))


def _linear_residual_kernel(x_ref, w_ref, bias_ref, res_ref, o_ref, acc_ref):
    """o = x @ w + bias + residual, with K-axis tiling and an f32 accumulator."""
    k = pl.program_id(2)

    @pl.when(k == 0)
    def _():
        acc_ref[...] = jnp.zeros_like(acc_ref)

    acc_ref[...] += jnp.dot(x_ref[...], w_ref[...],
                            preferred_element_type=jnp.float32)

    @pl.when(k == pl.num_programs(2) - 1)
    def _():
        out = (acc_ref[...] + bias_ref[...].astype(jnp.float32)
               + res_ref[...].astype(jnp.float32))
        o_ref[...] = out.astype(o_ref.dtype)


def pallas_linear_residual(x, w, bias, residual):
    M, K = x.shape
    K2, N = w.shape
    assert K == K2 and residual.shape == (M, N)
    tm = _pick_tile(M, (512, 256, 128))
    tn = _pick_tile(N, (512, 256, 128))
    tk = _pick_tile(K, (512, 256))
    grid = (M // tm, N // tn, K // tk)
    return pl.pallas_call(
        _linear_residual_kernel,
        out_shape=jax.ShapeDtypeStruct((M, N), x.dtype),
        grid=grid,
        in_specs=[
            pl.BlockSpec((tm, tk), lambda i, j, k: (i, k)),
            pl.BlockSpec((tk, tn), lambda i, j, k: (k, j)),
            pl.BlockSpec((1, tn), lambda i, j, k: (0, j)),
            pl.BlockSpec((tm, tn), lambda i, j, k: (i, j)),
        ],
        out_specs=pl.BlockSpec((tm, tn), lambda i, j, k: (i, j)),
        scratch_shapes=[pltpu.VMEM((tm, tn), jnp.float32)],
        compiler_params=pltpu.CompilerParams(
            dimension_semantics=("parallel", "parallel", "arbitrary"),
            vmem_limit_bytes=VMEM_LIMIT),
    )(x, w, bias.reshape(1, N), residual)


def _layernorm_kernel(x_ref, g_ref, b_ref, o_ref):
    """Row-wise LayerNorm over the last axis (eps = 1e-5, matching nn.LayerNorm)."""
    x = x_ref[...].astype(jnp.float32)
    mean = jnp.mean(x, axis=-1, keepdims=True)
    var = jnp.mean((x - mean) ** 2, axis=-1, keepdims=True)
    inv = jax.lax.rsqrt(var + 1e-5)
    y = (x - mean) * inv * g_ref[...].astype(jnp.float32) + b_ref[...].astype(jnp.float32)
    o_ref[...] = y.astype(o_ref.dtype)


def pallas_layernorm(x, gamma, beta):
    M, E = x.shape
    tm = _pick_tile(M, (512, 256, 128))
    return pl.pallas_call(
        _layernorm_kernel,
        out_shape=jax.ShapeDtypeStruct((M, E), x.dtype),
        grid=(M // tm,),
        in_specs=[
            pl.BlockSpec((tm, E), lambda i: (i, 0)),
            pl.BlockSpec((1, E), lambda i: (0, 0)),
            pl.BlockSpec((1, E), lambda i: (0, 0)),
        ],
        out_specs=pl.BlockSpec((tm, E), lambda i: (i, 0)),
        compiler_params=pltpu.CompilerParams(
            dimension_semantics=("parallel",),
            vmem_limit_bytes=VMEM_LIMIT),
    )(x, gamma.reshape(1, E), beta.reshape(1, E))


def _causal_attn_kernel(qkv_ref, o_ref, *, n_head, n_embd, head_dim, scale):
    """Causal softmax attention for one batch element, reading the fused qkv tile.

    qkv_ref: (T, 3E) -- columns [0:E)=Q, [E:2E)=K, [2E:3E)=V, heads contiguous
    o_ref  : (T, E)  -- head-concatenated output (same layout PyTorch produces
                        after transpose(1,2).reshape(B,T,E)), so no HBM transpose.
    """
    T = qkv_ref.shape[0]
    row = jax.lax.broadcasted_iota(jnp.int32, (T, T), 0)
    col = jax.lax.broadcasted_iota(jnp.int32, (T, T), 1)
    causal = col <= row
    # TODO(synk): for long T switch to a flash-style KV-tiled online-softmax loop
    # instead of materializing the full (T, T) score tile.
    for h in range(n_head):
        q = qkv_ref[:, h * head_dim:(h + 1) * head_dim]
        k = qkv_ref[:, n_embd + h * head_dim:n_embd + (h + 1) * head_dim]
        v = qkv_ref[:, 2 * n_embd + h * head_dim:2 * n_embd + (h + 1) * head_dim]
        # Fold 1/sqrt(Dh) into q (T*Dh multiplies instead of T*T on the scores).
        q = (q.astype(jnp.float32) * scale).astype(q.dtype)
        s = jnp.dot(q, k.T, preferred_element_type=jnp.float32)      # (T, T) f32
        s = jnp.where(causal, s, -1e30)
        m = jnp.max(s, axis=-1, keepdims=True)
        p = jnp.exp(s - m)
        denom = jnp.sum(p, axis=-1, keepdims=True)
        p = p * pl.reciprocal(denom, approx=True)                    # EUP slot
        o = jnp.dot(p.astype(v.dtype), v, preferred_element_type=jnp.float32)
        o_ref[:, h * head_dim:(h + 1) * head_dim] = o.astype(o_ref.dtype)


def pallas_causal_attention(qkv, n_head):
    """qkv: (B, T, 3E) fused projection -> (B, T, E) head-concatenated output."""
    B, T, three_e = qkv.shape
    E = three_e // 3
    Dh = E // n_head
    scale = 1.0 / math.sqrt(Dh)
    return pl.pallas_call(
        functools.partial(_causal_attn_kernel, n_head=n_head, n_embd=E,
                          head_dim=Dh, scale=scale),
        out_shape=jax.ShapeDtypeStruct((B, T, E), qkv.dtype),
        grid=(B,),
        in_specs=[pl.BlockSpec((None, T, three_e), lambda b: (b, 0, 0))],
        out_specs=pl.BlockSpec((None, T, E), lambda b: (b, 0, 0)),
        compiler_params=pltpu.CompilerParams(
            dimension_semantics=("parallel",),
            vmem_limit_bytes=VMEM_LIMIT),
    )(qkv)


# ----------------------------------------------------------------------------
# Parameter construction (deterministic synthetic init)
# ----------------------------------------------------------------------------
def init_params(key, *, vocab_size, block_size, n_layer, n_head, n_embd, itc_embd):
    def nrm(k, shape, std=0.02):
        return (jax.random.normal(k, shape, jnp.float32) * std).astype(COMPUTE_DTYPE)

    keys = jax.random.split(key, 4 + n_layer)
    params = {
        "wte": nrm(keys[0], (vocab_size, n_embd)),
        "wpe": nrm(keys[1], (block_size, n_embd)),
        "lnf_g": jnp.ones((n_embd,), jnp.float32),
        "lnf_b": jnp.zeros((n_embd,), jnp.float32),
        "txt_proj_w": nrm(keys[2], (n_embd, itc_embd)),
        "txt_proj_b": jnp.zeros((itc_embd,), jnp.float32),
        "layers": [],
    }
    for li in range(n_layer):
        lk = jax.random.split(keys[4 + li], 4)
        params["layers"].append({
            "ln1_g": jnp.ones((n_embd,), jnp.float32),
            "ln1_b": jnp.zeros((n_embd,), jnp.float32),
            "qkv_w": nrm(lk[0], (n_embd, 3 * n_embd)),
            "qkv_b": jnp.zeros((3 * n_embd,), jnp.float32),
            "attn_proj_w": nrm(lk[1], (n_embd, n_embd)),
            "attn_proj_b": jnp.zeros((n_embd,), jnp.float32),
            "ln2_g": jnp.ones((n_embd,), jnp.float32),
            "ln2_b": jnp.zeros((n_embd,), jnp.float32),
            "fc_w": nrm(lk[2], (n_embd, 4 * n_embd)),
            "fc_b": jnp.zeros((4 * n_embd,), jnp.float32),
            "mlp_proj_w": nrm(lk[3], (4 * n_embd, n_embd)),
            "mlp_proj_b": jnp.zeros((n_embd,), jnp.float32),
        })
    return params


# ----------------------------------------------------------------------------
# TextEncoder forward (GPT encoder + last-token projection)
# ----------------------------------------------------------------------------
def text_encoder_forward(params, inp, *, n_head):
    B, T = inp.shape
    E = params["wte"].shape[1]

    # Embedding gather + positional add (glue).
    # TODO(synk): embedding gather done with jnp.take in plain JAX (no clean tiny-kernel win).
    x = jnp.take(params["wte"], inp, axis=0) + params["wpe"][:T][None, :, :]  # (B,T,E) bf16

    for layer in params["layers"]:
        x2d = x.reshape(B * T, E)

        # ---- attention block: x = x + proj(attn(ln1(x))) ----
        # Fused LN1 + QKV projection (one kernel, no LN round trip).
        qkv = pallas_ln_linear(x2d, layer["ln1_g"], layer["ln1_b"],
                               layer["qkv_w"], layer["qkv_b"])          # (B*T, 3E)
        # Attention reads the fused (B, T, 3E) buffer directly (no HBM transposes)
        # and emits the head-concatenated (B, T, E) layout.
        att = pallas_causal_attention(qkv.reshape(B, T, 3 * E), n_head)  # (B, T, E)
        # attn output projection with the residual add fused into the kernel.
        x2d = pallas_linear_residual(att.reshape(B * T, E),
                                     layer["attn_proj_w"], layer["attn_proj_b"],
                                     residual=x2d)

        # ---- MLP block: x = x + proj(gelu(fc(ln2(x)))) ----
        ff = pallas_ln_linear(x2d, layer["ln2_g"], layer["ln2_b"],
                              layer["fc_w"], layer["fc_b"], activation="gelu")
        x2d = pallas_linear_residual(ff, layer["mlp_proj_w"], layer["mlp_proj_b"],
                                     residual=x2d)
        x = x2d.reshape(B, T, E)

    # Final LayerNorm -> GPT output hidden states.
    out = pallas_layernorm(x.reshape(B * T, E),
                           params["lnf_g"], params["lnf_b"]).reshape(B, T, E)

    # TextEncoder head: txt_proj(out[:, -1, :]) == txt_proj(LN_f(x[:, -1, :])),
    # so fuse the final LN with the projection on just the last-token rows.
    proj = pallas_ln_linear(x[:, -1, :], params["lnf_g"], params["lnf_b"],
                            params["txt_proj_w"], params["txt_proj_b"])
    return proj, out


# ----------------------------------------------------------------------------
if __name__ == "__main__":
    # Small synthetic GPT config.
    VOCAB = 32
    BLOCK = 8       # max sequence length
    N_LAYER = 2
    N_HEAD = 2
    N_EMBD = 32     # tconfig.n_embd
    ITC_EMBD = 16   # config.itc_embd
    B, T = 2, 8

    key = jax.random.PRNGKey(0)
    pkey, ikey = jax.random.split(key)
    params = init_params(pkey, vocab_size=VOCAB, block_size=BLOCK,
                         n_layer=N_LAYER, n_head=N_HEAD,
                         n_embd=N_EMBD, itc_embd=ITC_EMBD)
    inp = jax.random.randint(ikey, (B, T), 0, VOCAB, dtype=jnp.int32)

    fwd = jax.jit(functools.partial(text_encoder_forward, n_head=N_HEAD))
    proj, out = fwd(params, inp)
    jax.block_until_ready((proj, out))

    assert proj.shape == (B, ITC_EMBD) and out.shape == (B, T, N_EMBD)
    assert jnp.all(jnp.isfinite(proj.astype(jnp.float32)))
    assert jnp.all(jnp.isfinite(out.astype(jnp.float32)))
    print("KERNEL_OK")
</pallas_src>

<mosaic_0001>
module attributes {stable_mosaic.version = 11 : i64} {
  func.func @_ln_linear_kernel(%arg0: i32, %arg1: i32, %arg2: memref<16x32xbf16, #tpu.memory_space<vmem>>, %arg3: memref<1x32xf32, #tpu.memory_space<vmem>>, %arg4: memref<1x32xf32, #tpu.memory_space<vmem>>, %arg5: memref<32x96xbf16, #tpu.memory_space<vmem>>, %arg6: memref<1x96xf32, #tpu.memory_space<vmem>>, %arg7: memref<16x96xbf16, #tpu.memory_space<vmem>>) attributes {dimension_semantics = [#tpu.dimension_semantics<parallel>, #tpu.dimension_semantics<parallel>], iteration_bounds = array<i64: 1, 1>, scalar_prefetch = 0 : i64, scratch_operands = 0 : i64, tpu.core_type = #tpu.core_type<tc>, window_params = [{transform_indices = @transform_0, window_bounds = array<i64: 16, 32>}, {pipeline_mode = #tpu.pipeline_mode<synchronous>, transform_indices = @transform_1, window_bounds = array<i64: 1, 32>}, {pipeline_mode = #tpu.pipeline_mode<synchronous>, transform_indices = @transform_2, window_bounds = array<i64: 1, 32>}, {transform_indices = @transform_3, window_bounds = array<i64: 32, 96>}, {transform_indices = @transform_4, window_bounds = array<i64: 1, 96>}, {transform_indices = @transform_5, window_bounds = array<i64: 16, 96>}]} {
    %c0 = arith.constant 0 : index
    %c0_0 = arith.constant 0 : index
    %0 = vector.load %arg2[%c0, %c0_0] : memref<16x32xbf16, #tpu.memory_space<vmem>>, vector<16x32xbf16>
    %1 = arith.extf %0 : vector<16x32xbf16> to vector<16x32xf32>
    %cst = arith.constant dense<0.000000e+00> : vector<16xf32>
    %2 = vector.multi_reduction <add>, %1, %cst [1] : vector<16x32xf32> to vector<16xf32>
    %3 = vector.shape_cast %2 : vector<16xf32> to vector<16x1xf32>
    %cst_1 = arith.constant 3.200000e+01 : f32
    %4 = vector.broadcast %cst_1 : f32 to vector<16x1xf32>
    %5 = arith.divf %3, %4 : vector<16x1xf32>
    %6 = vector.broadcast %5 : vector<16x1xf32> to vector<16x32xf32>
    %7 = arith.subf %1, %6 : vector<16x32xf32>
    %8 = arith.mulf %7, %7 : vector<16x32xf32>
    %cst_2 = arith.constant dense<0.000000e+00> : vector<16xf32>
    %9 = vector.multi_reduction <add>, %8, %cst_2 [1] : vector<16x32xf32> to vector<16xf32>
    %10 = vector.shape_cast %9 : vector<16xf32> to vector<16x1xf32>
    %cst_3 = arith.constant 3.200000e+01 : f32
    %11 = vector.broadcast %cst_3 : f32 to vector<16x1xf32>
    %12 = arith.divf %10, %11 : vector<16x1xf32>
    %cst_4 = arith.constant 9.99999974E-6 : f32
    %13 = vector.broadcast %cst_4 : f32 to vector<16x1xf32>
    %14 = arith.addf %12, %13 : vector<16x1xf32>
    %15 = math.rsqrt %14 : vector<16x1xf32>
    %16 = vector.broadcast %5 : vector<16x1xf32> to vector<16x32xf32>
    %17 = arith.subf %1, %16 : vector<16x32xf32>
    %18 = vector.broadcast %15 : vector<16x1xf32> to vector<16x32xf32>
    %19 = arith.mulf %17, %18 : vector<16x32xf32>
    %c0_5 = arith.constant 0 : index
    %c0_6 = arith.constant 0 : index
    %20 = vector.load %arg3[%c0_5, %c0_6] : memref<1x32xf32, #tpu.memory_space<vmem>>, vector<1x32xf32>
    %21 = vector.broadcast %20 : vector<1x32xf32> to vector<16x32xf32>
    %22 = arith.mulf %19, %21 : vector<16x32xf32>
    %c0_7 = arith.constant 0 : index
    %c0_8 = arith.constant 0 : index
    %23 = vector.load %arg4[%c0_7, %c0_8] : memref<1x32xf32, #tpu.memory_space<vmem>>, vector<1x32xf32>
    %24 = vector.broadcast %23 : vector<1x32xf32> to vector<16x32xf32>
    %25 = arith.addf %22, %24 : vector<16x32xf32>
    %26 = arith.truncf %25 : vector<16x32xf32> to vector<16x32xbf16>
    %c0_9 = arith.constant 0 : index
    %c0_10 = arith.constant 0 : index
    %27 = vector.load %arg5[%c0_9, %c0_10] : memref<32x96xbf16, #tpu.memory_space<vmem>>, vector<32x96xbf16>
    %cst_11 = arith.constant dense<0.000000e+00> : vector<16x96xf32>
    %28 = tpu.matmul %26, %27, %cst_11 {dimension_numbers = #tpu.dot_dimension_numbers<[1], [0], [0], [1], [0, 0, 1, 1], [], []>} : vector<16x32xbf16>, vector<32x96xbf16>, vector<16x96xf32> -> vector<16x96xf32>
    %c0_12 = arith.constant 0 : index
    %c0_13 = arith.constant 0 : index
    %29 = vector.load %arg6[%c0_12, %c0_13] : memref<1x96xf32, #tpu.memory_space<vmem>>, vector<1x96xf32>
    %30 = vector.broadcast %29 : vector<1x96xf32> to vector<16x96xf32>
    %31 = arith.addf %28, %30 : vector<16x96xf32>
    %32 = arith.truncf %31 : vector<16x96xf32> to vector<16x96xbf16>
    %c0_14 = arith.constant 0 : index
    %c0_15 = arith.constant 0 : index
    %33 = vector.load %arg7[%c0_14, %c0_15] : memref<16x96xbf16, #tpu.memory_space<vmem>>, vector<16x96xbf16>
    tpu.vector_store %arg7[%c0_14, %c0_15], %32 {strides = array<i32>} : memref<16x96xbf16, #tpu.memory_space<vmem>>, vector<16x96xbf16>,
    return
  }
  func.func @transform_0(%arg0: i32, %arg1: i32) -> (i32, i32) {
    %c0_i32 = arith.constant 0 : i32
    %c0_i32_0 = arith.constant 0 : i32
    return %arg0, %c0_i32 : i32, i32
  }
  func.func @transform_1(%arg0: i32, %arg1: i32) -> (i32, i32) {
    %c0_i32 = arith.constant 0 : i32
    %c0_i32_0 = arith.constant 0 : i32
    %c0_i32_1 = arith.constant 0 : i32
    return %c0_i32, %c0_i32_0 : i32, i32
  }
  func.func @transform_2(%arg0: i32, %arg1: i32) -> (i32, i32) {
    %c0_i32 = arith.constant 0 : i32
    %c0_i32_0 = arith.constant 0 : i32
    %c0_i32_1 = arith.constant 0 : i32
    return %c0_i32, %c0_i32_0 : i32, i32
  }
  func.func @transform_3(%arg0: i32, %arg1: i32) -> (i32, i32) {
    %c0_i32 = arith.constant 0 : i32
    %c0_i32_0 = arith.constant 0 : i32
    return %c0_i32, %arg1 : i32, i32
  }
  func.func @transform_4(%arg0: i32, %arg1: i32) -> (i32, i32) {
    %c0_i32 = arith.constant 0 : i32
    %c0_i32_0 = arith.constant 0 : i32
    return %c0_i32, %arg1 : i32, i32
  }
  func.func @transform_5(%arg0: i32, %arg1: i32) -> (i32, i32) {
    %c0_i32 = arith.constant 0 : i32
    return %arg0, %arg1 : i32, i32
  }
}

module attributes {stable_mosaic.version = 11 : i64} {
  func.func @_causal_attn_kernel(%arg0: i32, %arg1: memref<1x8x96xbf16, #tpu.memory_space<vmem>>, %arg2: memref<1x8x32xbf16, #tpu.memory_space<vmem>>) attributes {dimension_semantics = [#tpu.dimension_semantics<parallel>], iteration_bounds = array<i64: 2>, scalar_prefetch = 0 : i64, scratch_operands = 0 : i64, tpu.core_type = #tpu.core_type<tc>, window_params = [{transform_indices = @transform_0, window_bounds = array<i64: 1, 8, 96>}, {transform_indices = @transform_1, window_bounds = array<i64: 1, 8, 32>}]} {
    %0 = tpu.iota {dimensions = array<i32: 0>} : vector<8x8xi32>
    %1 = tpu.iota {dimensions = array<i32: 1>} : vector<8x8xi32>
    %2 = arith.cmpi sle, %1, %0 : vector<8x8xi32>
    %c0 = arith.constant 0 : index
    %c0_0 = arith.constant 0 : index
    %c0_1 = arith.constant 0 : index
    %3 = vector.load %arg1[%c0, %c0_0, %c0_1] : memref<1x8x96xbf16, #tpu.memory_space<vmem>>, vector<1x8x16xbf16>
    %4 = vector.shape_cast %3 : vector<1x8x16xbf16> to vector<8x16xbf16>
    %c0_2 = arith.constant 0 : index
    %c0_3 = arith.constant 0 : index
    %c32 = arith.constant 32 : index
    %5 = vector.load %arg1[%c0_2, %c0_3, %c32] : memref<1x8x96xbf16, #tpu.memory_space<vmem>>, vector<1x8x16xbf16>
    %6 = vector.shape_cast %5 : vector<1x8x16xbf16> to vector<8x16xbf16>
    %c0_4 = arith.constant 0 : index
    %c0_5 = arith.constant 0 : index
    %c64 = arith.constant 64 : index
    %7 = vector.load %arg1[%c0_4, %c0_5, %c64] : memref<1x8x96xbf16, #tpu.memory_space<vmem>>, vector<1x8x16xbf16>
    %8 = vector.shape_cast %7 : vector<1x8x16xbf16> to vector<8x16xbf16>
    %9 = arith.extf %4 : vector<8x16xbf16> to vector<8x16xf32>
    %cst = arith.constant 2.500000e-01 : f32
    %10 = vector.broadcast %cst : f32 to vector<8x16xf32>
    %11 = arith.mulf %9, %10 : vector<8x16xf32>
    %12 = arith.truncf %11 : vector<8x16xf32> to vector<8x16xbf16>
    %13 = tpu.transpose %6, [1, 0] : vector<8x16xbf16> -> vector<16x8xbf16>
    %cst_6 = arith.constant dense<0.000000e+00> : vector<8x8xf32>
    %14 = tpu.matmul %12, %13, %cst_6 {dimension_numbers = #tpu.dot_dimension_numbers<[1], [0], [0], [1], [0, 0, 1, 1], [], []>} : vector<8x16xbf16>, vector<16x8xbf16>, vector<8x8xf32> -> vector<8x8xf32>
    %cst_7 = arith.constant -1.000000e+30 : f32
    %15 = vector.broadcast %cst_7 : f32 to vector<8x8xf32>
    %16 = arith.select %2, %14, %15 : vector<8x8xi1>, vector<8x8xf32>
    %cst_8 = arith.constant dense<0xFF800000> : vector<8xf32>
    %17 = vector.multi_reduction <maximumf>, %16, %cst_8 [1] : vector<8x8xf32> to vector<8xf32>
    %18 = vector.shape_cast %17 : vector<8xf32> to vector<8x1xf32>
    %19 = vector.broadcast %18 : vector<8x1xf32> to vector<8x8xf32>
    %20 = arith.subf %16, %19 : vector<8x8xf32>
    %21 = math.exp %20 : vector<8x8xf32>
    %cst_9 = arith.constant dense<0.000000e+00> : vector<8xf32>
    %22 = vector.multi_reduction <add>, %21, %cst_9 [1] : vector<8x8xf32> to vector<8xf32>
    %23 = vector.shape_cast %22 : vector<8xf32> to vector<8x1xf32>
    %24 = tpu.reciprocal %23 {approx = true} : vector<8x1xf32> -> vector<8x1xf32>
    %25 = vector.broadcast %24 : vector<8x1xf32> to vector<8x8xf32>
    %26 = arith.mulf %21, %25 : vector<8x8xf32>
    %27 = arith.truncf %26 : vector<8x8xf32> to vector<8x8xbf16>
    %cst_10 = arith.constant dense<0.000000e+00> : vector<8x16xf32>
    %28 = tpu.matmul %27, %8, %cst_10 {dimension_numbers = #tpu.dot_dimension_numbers<[1], [0], [0], [1], [0, 0, 1, 1], [], []>} : vector<8x8xbf16>, vector<8x16xbf16>, vector<8x16xf32> -> vector<8x16xf32>
    %29 = arith.truncf %28 : vector<8x16xf32> to vector<8x16xbf16>
    %c0_11 = arith.constant 0 : index
    %c0_12 = arith.constant 0 : index
    %c0_13 = arith.constant 0 : index
    %30 = vector.load %arg2[%c0_11, %c0_12, %c0_13] : memref<1x8x32xbf16, #tpu.memory_space<vmem>>, vector<1x8x16xbf16>
    %31 = vector.shape_cast %30 : vector<1x8x16xbf16> to vector<8x16xbf16>
    %32 = vector.shape_cast %29 : vector<8x16xbf16> to vector<1x8x16xbf16>
    tpu.vector_store %arg2[%c0_11, %c0_12, %c0_13], %32 {strides = array<i32>} : memref<1x8x32xbf16, #tpu.memory_space<vmem>>, vector<1x8x16xbf16>,
    %c0_14 = arith.constant 0 : index
    %c0_15 = arith.constant 0 : index
    %c16 = arith.constant 16 : index
    %33 = vector.load %arg1[%c0_14, %c0_15, %c16] : memref<1x8x96xbf16, #tpu.memory_space<vmem>>, vector<1x8x16xbf16>
    %34 = vector.shape_cast %33 : vector<1x8x16xbf16> to vector<8x16xbf16>
    %c0_16 = arith.constant 0 : index
    %c0_17 = arith.constant 0 : index
    %c48 = arith.constant 48 : index
    %35 = vector.load %arg1[%c0_16, %c0_17, %c48] : memref<1x8x96xbf16, #tpu.memory_space<vmem>>, vector<1x8x16xbf16>
    %36 = vector.shape_cast %35 : vector<1x8x16xbf16> to vector<8x16xbf16>
    %c0_18 = arith.constant 0 : index
    %c0_19 = arith.constant 0 : index
    %c80 = arith.constant 80 : index
    %37 = vector.load %arg1[%c0_18, %c0_19, %c80] : memref<1x8x96xbf16, #tpu.memory_space<vmem>>, vector<1x8x16xbf16>
    %38 = vector.shape_cast %37 : vector<1x8x16xbf16> to vector<8x16xbf16>
    %39 = arith.extf %34 : vector<8x16xbf16> to vector<8x16xf32>
    %cst_20 = arith.constant 2.500000e-01 : f32
    %40 = vector.broadcast %cst_20 : f32 to vector<8x16xf32>
    %41 = arith.mulf %39, %40 : vector<8x16xf32>
    %42 = arith.truncf %41 : vector<8x16xf32> to vector<8x16xbf16>
    %43 = tpu.transpose %36, [1, 0] : vector<8x16xbf16> -> vector<16x8xbf16>
    %cst_21 = arith.constant dense<0.000000e+00> : vector<8x8xf32>
    %44 = tpu.matmul %42, %43, %cst_21 {dimension_numbers = #tpu.dot_dimension_numbers<[1], [0], [0], [1], [0, 0, 1, 1], [], []>} : vector<8x16xbf16>, vector<16x8xbf16>, vector<8x8xf32> -> vector<8x8xf32>
    %cst_22 = arith.constant -1.000000e+30 : f32
    %45 = vector.broadcast %cst_22 : f32 to vector<8x8xf32>
    %46 = arith.select %2, %44, %45 : vector<8x8xi1>, vector<8x8xf32>
    %cst_23 = arith.constant dense<0xFF800000> : vector<8xf32>
    %47 = vector.multi_reduction <maximumf>, %46, %cst_23 [1] : vector<8x8xf32> to vector<8xf32>
    %48 = vector.shape_cast %47 : vector<8xf32> to vector<8x1xf32>
    %49 = vector.broadcast %48 : vector<8x1xf32> to vector<8x8xf32>
    %50 = arith.subf %46, %49 : vector<8x8xf32>
    %51 = math.exp %50 : vector<8x8xf32>
    %cst_24 = arith.constant dense<0.000000e+00> : vector<8xf32>
    %52 = vector.multi_reduction <add>, %51, %cst_24 [1] : vector<8x8xf32> to vector<8xf32>
    %53 = vector.shape_cast %52 : vector<8xf32> to vector<8x1xf32>
    %54 = tpu.reciprocal %53 {approx = true} : vector<8x1xf32> -> vector<8x1xf32>
    %55 = vector.broadcast %54 : vector<8x1xf32> to vector<8x8xf32>
    %56 = arith.mulf %51, %55 : vector<8x8xf32>
    %57 = arith.truncf %56 : vector<8x8xf32> to vector<8x8xbf16>
    %cst_25 = arith.constant dense<0.000000e+00> : vector<8x16xf32>
    %58 = tpu.matmul %57, %38, %cst_25 {dimension_numbers = #tpu.dot_dimension_numbers<[1], [0], [0], [1], [0, 0, 1, 1], [], []>} : vector<8x8xbf16>, vector<8x16xbf16>, vector<8x16xf32> -> vector<8x16xf32>
    %59 = arith.truncf %58 : vector<8x16xf32> to vector<8x16xbf16>
    %c0_26 = arith.constant 0 : index
    %c0_27 = arith.constant 0 : index
    %c16_28 = arith.constant 16 : index
    %60 = vector.load %arg2[%c0_26, %c0_27, %c16_28] : memref<1x8x32xbf16, #tpu.memory_space<vmem>>, vector<1x8x16xbf16>
    %61 = vector.shape_cast %60 : vector<1x8x16xbf16> to vector<8x16xbf16>
    %62 = vector.shape_cast %59 : vector<8x16xbf16> to vector<1x8x16xbf16>
    tpu.vector_store %arg2[%c0_26, %c0_27, %c16_28], %62 {strides = array<i32>} : memref<1x8x32xbf16, #tpu.memory_space<vmem>>, vector<1x8x16xbf16>,
    return
  }
  func.func @transform_0(%arg0: i32) -> (i32, i32, i32) {
    %c0_i32 = arith.constant 0 : i32
    %c0_i32_0 = arith.constant 0 : i32
    %c0_i32_1 = arith.constant 0 : i32
    return %arg0, %c0_i32, %c0_i32_0 : i32, i32, i32
  }
  func.func @transform_1(%arg0: i32) -> (i32, i32, i32) {
    %c0_i32 = arith.constant 0 : i32
    %c0_i32_0 = arith.constant 0 : i32
    %c0_i32_1 = arith.constant 0 : i32
    return %arg0, %c0_i32, %c0_i32_0 : i32, i32, i32
  }
}

module attributes {stable_mosaic.version = 11 : i64} {
  func.func @_linear_residual_kernel(%arg0: i32, %arg1: i32, %arg2: i32, %arg3: memref<16x32xbf16, #tpu.memory_space<vmem>>, %arg4: memref<32x32xbf16, #tpu.memory_space<vmem>>, %arg5: memref<1x32xf32, #tpu.memory_space<vmem>>, %arg6: memref<16x32xbf16, #tpu.memory_space<vmem>>, %arg7: memref<16x32xbf16, #tpu.memory_space<vmem>>, %arg8: memref<16x32xf32, #tpu.memory_space<vmem>>) attributes {dimension_semantics = [#tpu.dimension_semantics<parallel>, #tpu.dimension_semantics<parallel>, #tpu.dimension_semantics<arbitrary>], iteration_bounds = array<i64: 1, 1, 1>, scalar_prefetch = 0 : i64, scratch_operands = 1 : i64, tpu.core_type = #tpu.core_type<tc>, window_params = [{transform_indices = @transform_0, window_bounds = array<i64: 16, 32>}, {transform_indices = @transform_1, window_bounds = array<i64: 32, 32>}, {transform_indices = @transform_2, window_bounds = array<i64: 1, 32>}, {transform_indices = @transform_3, window_bounds = array<i64: 16, 32>}, {transform_indices = @transform_4, window_bounds = array<i64: 16, 32>}]} {
    %c0_i32 = arith.constant 0 : i32
    %0 = arith.cmpi eq, %arg2, %c0_i32 : i32
    %1 = arith.extui %0 : i1 to i32
    %c0_i32_0 = arith.constant 0 : i32
    %2 = arith.cmpi ne, %1, %c0_i32_0 : i32
    scf.if %2 {
      %cst_10 = arith.constant 0.000000e+00 : f32
      %12 = vector.broadcast %cst_10 : f32 to vector<16x32xf32>
      %c0_11 = arith.constant 0 : index
      %c0_12 = arith.constant 0 : index
      %13 = vector.load %arg8[%c0_11, %c0_12] : memref<16x32xf32, #tpu.memory_space<vmem>>, vector<16x32xf32>
      tpu.vector_store %arg8[%c0_11, %c0_12], %12 {strides = array<i32>} : memref<16x32xf32, #tpu.memory_space<vmem>>, vector<16x32xf32>,
    } else {
    }
    %c0 = arith.constant 0 : index
    %c0_1 = arith.constant 0 : index
    %3 = vector.load %arg8[%c0, %c0_1] : memref<16x32xf32, #tpu.memory_space<vmem>>, vector<16x32xf32>
    %c0_2 = arith.constant 0 : index
    %c0_3 = arith.constant 0 : index
    %4 = vector.load %arg3[%c0_2, %c0_3] : memref<16x32xbf16, #tpu.memory_space<vmem>>, vector<16x32xbf16>
    %c0_4 = arith.constant 0 : index
    %c0_5 = arith.constant 0 : index
    %5 = vector.load %arg4[%c0_4, %c0_5] : memref<32x32xbf16, #tpu.memory_space<vmem>>, vector<32x32xbf16>
    %cst = arith.constant dense<0.000000e+00> : vector<16x32xf32>
    %6 = tpu.matmul %4, %5, %cst {dimension_numbers = #tpu.dot_dimension_numbers<[1], [0], [0], [1], [0, 0, 1, 1], [], []>} : vector<16x32xbf16>, vector<32x32xbf16>, vector<16x32xf32> -> vector<16x32xf32>
    %7 = arith.addf %3, %6 : vector<16x32xf32>
    %c0_6 = arith.constant 0 : index
    %c0_7 = arith.constant 0 : index
    %8 = vector.load %arg8[%c0_6, %c0_7] : memref<16x32xf32, #tpu.memory_space<vmem>>, vector<16x32xf32>
    tpu.vector_store %arg8[%c0_6, %c0_7], %7 {strides = array<i32>} : memref<16x32xf32, #tpu.memory_space<vmem>>, vector<16x32xf32>,
    %c0_i32_8 = arith.constant 0 : i32
    %9 = arith.cmpi eq, %arg2, %c0_i32_8 : i32
    %10 = arith.extui %9 : i1 to i32
    %c0_i32_9 = arith.constant 0 : i32
    %11 = arith.cmpi ne, %10, %c0_i32_9 : i32
    scf.if %11 {
      %c0_10 = arith.constant 0 : index
      %c0_11 = arith.constant 0 : index
      %12 = vector.load %arg8[%c0_10, %c0_11] : memref<16x32xf32, #tpu.memory_space<vmem>>, vector<16x32xf32>
      %c0_12 = arith.constant 0 : index
      %c0_13 = arith.constant 0 : index
      %13 = vector.load %arg5[%c0_12, %c0_13] : memref<1x32xf32, #tpu.memory_space<vmem>>, vector<1x32xf32>
      %14 = vector.broadcast %13 : vector<1x32xf32> to vector<16x32xf32>
      %15 = arith.addf %12, %14 : vector<16x32xf32>
      %c0_14 = arith.constant 0 : index
      %c0_15 = arith.constant 0 : index
      %16 = vector.load %arg6[%c0_14, %c0_15] : memref<16x32xbf16, #tpu.memory_space<vmem>>, vector<16x32xbf16>
      %17 = arith.extf %16 : vector<16x32xbf16> to vector<16x32xf32>
      %18 = arith.addf %15, %17 : vector<16x32xf32>
      %19 = arith.truncf %18 : vector<16x32xf32> to vector<16x32xbf16>
      %c0_16 = arith.constant 0 : index
      %c0_17 = arith.constant 0 : index
      %20 = vector.load %arg7[%c0_16, %c0_17] : memref<16x32xbf16, #tpu.memory_space<vmem>>, vector<16x32xbf16>
      tpu.vector_store %arg7[%c0_16, %c0_17], %19 {strides = array<i32>} : memref<16x32xbf16, #tpu.memory_space<vmem>>, vector<16x32xbf16>,
    } else {
    }
    return
  }
  func.func @transform_0(%arg0: i32, %arg1: i32, %arg2: i32) -> (i32, i32) {
    %c0_i32 = arith.constant 0 : i32
    return %arg0, %arg2 : i32, i32
  }
  func.func @transform_1(%arg0: i32, %arg1: i32, %arg2: i32) -> (i32, i32) {
    %c0_i32 = arith.constant 0 : i32
    return %arg2, %arg1 : i32, i32
  }
  func.func @transform_2(%arg0: i32, %arg1: i32, %arg2: i32) -> (i32, i32) {
    %c0_i32 = arith.constant 0 : i32
    %c0_i32_0 = arith.constant 0 : i32
    return %c0_i32, %arg1 : i32, i32
  }
  func.func @transform_3(%arg0: i32, %arg1: i32, %arg2: i32) -> (i32, i32) {
    %c0_i32 = arith.constant 0 : i32
    return %arg0, %arg1 : i32, i32
  }
  func.func @transform_4(%arg0: i32, %arg1: i32, %arg2: i32) -> (i32, i32) {
    %c0_i32 = arith.constant 0 : i32
    return %arg0, %arg1 : i32, i32
  }
}

module attributes {stable_mosaic.version = 11 : i64} {
  func.func @_ln_linear_kernel(%arg0: i32, %arg1: i32, %arg2: memref<16x32xbf16, #tpu.memory_space<vmem>>, %arg3: memref<1x32xf32, #tpu.memory_space<vmem>>, %arg4: memref<1x32xf32, #tpu.memory_space<vmem>>, %arg5: memref<32x128xbf16, #tpu.memory_space<vmem>>, %arg6: memref<1x128xf32, #tpu.memory_space<vmem>>, %arg7: memref<16x128xbf16, #tpu.memory_space<vmem>>) attributes {dimension_semantics = [#tpu.dimension_semantics<parallel>, #tpu.dimension_semantics<parallel>], iteration_bounds = array<i64: 1, 1>, scalar_prefetch = 0 : i64, scratch_operands = 0 : i64, tpu.core_type = #tpu.core_type<tc>, window_params = [{transform_indices = @transform_0, window_bounds = array<i64: 16, 32>}, {pipeline_mode = #tpu.pipeline_mode<synchronous>, transform_indices = @transform_1, window_bounds = array<i64: 1, 32>}, {pipeline_mode = #tpu.pipeline_mode<synchronous>, transform_indices = @transform_2, window_bounds = array<i64: 1, 32>}, {transform_indices = @transform_3, window_bounds = array<i64: 32, 128>}, {transform_indices = @transform_4, window_bounds = array<i64: 1, 128>}, {transform_indices = @transform_5, window_bounds = array<i64: 16, 128>}]} {
    %c0 = arith.constant 0 : index
    %c0_0 = arith.constant 0 : index
    %0 = vector.load %arg2[%c0, %c0_0] : memref<16x32xbf16, #tpu.memory_space<vmem>>, vector<16x32xbf16>
    %1 = arith.extf %0 : vector<16x32xbf16> to vector<16x32xf32>
    %cst = arith.constant dense<0.000000e+00> : vector<16xf32>
    %2 = vector.multi_reduction <add>, %1, %cst [1] : vector<16x32xf32> to vector<16xf32>
    %3 = vector.shape_cast %2 : vector<16xf32> to vector<16x1xf32>
    %cst_1 = arith.constant 3.200000e+01 : f32
    %4 = vector.broadcast %cst_1 : f32 to vector<16x1xf32>
    %5 = arith.divf %3, %4 : vector<16x1xf32>
    %6 = vector.broadcast %5 : vector<16x1xf32> to vector<16x32xf32>
    %7 = arith.subf %1, %6 : vector<16x32xf32>
    %8 = arith.mulf %7, %7 : vector<16x32xf32>
    %cst_2 = arith.constant dense<0.000000e+00> : vector<16xf32>
    %9 = vector.multi_reduction <add>, %8, %cst_2 [1] : vector<16x32xf32> to vector<16xf32>
    %10 = vector.shape_cast %9 : vector<16xf32> to vector<16x1xf32>
    %cst_3 = arith.constant 3.200000e+01 : f32
    %11 = vector.broadcast %cst_3 : f32 to vector<16x1xf32>
    %12 = arith.divf %10, %11 : vector<16x1xf32>
    %cst_4 = arith.constant 9.99999974E-6 : f32
    %13 = vector.broadcast %cst_4 : f32 to vector<16x1xf32>
    %14 = arith.addf %12, %13 : vector<16x1xf32>
    %15 = math.rsqrt %14 : vector<16x1xf32>
    %16 = vector.broadcast %5 : vector<16x1xf32> to vector<16x32xf32>
    %17 = arith.subf %1, %16 : vector<16x32xf32>
    %18 = vector.broadcast %15 : vector<16x1xf32> to vector<16x32xf32>
    %19 = arith.mulf %17, %18 : vector<16x32xf32>
    %c0_5 = arith.constant 0 : index
    %c0_6 = arith.constant 0 : index
    %20 = vector.load %arg3[%c0_5, %c0_6] : memref<1x32xf32, #tpu.memory_space<vmem>>, vector<1x32xf32>
    %21 = vector.broadcast %20 : vector<1x32xf32> to vector<16x32xf32>
    %22 = arith.mulf %19, %21 : vector<16x32xf32>
    %c0_7 = arith.constant 0 : index
    %c0_8 = arith.constant 0 : index
    %23 = vector.load %arg4[%c0_7, %c0_8] : memref<1x32xf32, #tpu.memory_space<vmem>>, vector<1x32xf32>
    %24 = vector.broadcast %23 : vector<1x32xf32> to vector<16x32xf32>
    %25 = arith.addf %22, %24 : vector<16x32xf32>
    %26 = arith.truncf %25 : vector<16x32xf32> to vector<16x32xbf16>
    %c0_9 = arith.constant 0 : index
    %c0_10 = arith.constant 0 : index
    %27 = vector.load %arg5[%c0_9, %c0_10] : memref<32x128xbf16, #tpu.memory_space<vmem>>, vector<32x128xbf16>
    %cst_11 = arith.constant dense<0.000000e+00> : vector<16x128xf32>
    %28 = tpu.matmul %26, %27, %cst_11 {dimension_numbers = #tpu.dot_dimension_numbers<[1], [0], [0], [1], [0, 0, 1, 1], [], []>} : vector<16x32xbf16>, vector<32x128xbf16>, vector<16x128xf32> -> vector<16x128xf32>
    %c0_12 = arith.constant 0 : index
    %c0_13 = arith.constant 0 : index
    %29 = vector.load %arg6[%c0_12, %c0_13] : memref<1x128xf32, #tpu.memory_space<vmem>>, vector<1x128xf32>
    %30 = vector.broadcast %29 : vector<1x128xf32> to vector<16x128xf32>
    %31 = arith.addf %28, %30 : vector<16x128xf32>
    %32 = arith.mulf %31, %31 : vector<16x128xf32>
    %33 = arith.mulf %31, %32 : vector<16x128xf32>
    %cst_14 = arith.constant 4.471500e-02 : f32
    %34 = vector.broadcast %cst_14 : f32 to vector<16x128xf32>
    %35 = arith.mulf %34, %33 : vector<16x128xf32>
    %36 = arith.addf %31, %35 : vector<16x128xf32>
    %cst_15 = arith.constant 0.797884583 : f32
    %37 = vector.broadcast %cst_15 : f32 to vector<16x128xf32>
    %38 = arith.mulf %37, %36 : vector<16x128xf32>
    %39 = math.tanh %38 : vector<16x128xf32>
    %cst_16 = arith.constant 1.000000e+00 : f32
    %40 = vector.broadcast %cst_16 : f32 to vector<16x128xf32>
    %41 = arith.addf %40, %39 : vector<16x128xf32>
    %cst_17 = arith.constant 5.000000e-01 : f32
    %42 = vector.broadcast %cst_17 : f32 to vector<16x128xf32>
    %43 = arith.mulf %42, %41 : vector<16x128xf32>
    %44 = arith.mulf %31, %43 : vector<16x128xf32>
    %45 = arith.truncf %44 : vector<16x128xf32> to vector<16x128xbf16>
    %c0_18 = arith.constant 0 : index
    %c0_19 = arith.constant 0 : index
    %46 = vector.load %arg7[%c0_18, %c0_19] : memref<16x128xbf16, #tpu.memory_space<vmem>>, vector<16x128xbf16>
    tpu.vector_store %arg7[%c0_18, %c0_19], %45 {strides = array<i32>} : memref<16x128xbf16, #tpu.memory_space<vmem>>, vector<16x128xbf16>,
    return
  }
  func.func @transform_0(%arg0: i32, %arg1: i32) -> (i32, i32) {
    %c0_i32 = arith.constant 0 : i32
    %c0_i32_0 = arith.constant 0 : i32
    return %arg0, %c0_i32 : i32, i32
  }
  func.func @transform_1(%arg0: i32, %arg1: i32) -> (i32, i32) {
    %c0_i32 = arith.constant 0 : i32
    %c0_i32_0 = arith.constant 0 : i32
    %c0_i32_1 = arith.constant 0 : i32
    return %c0_i32, %c0_i32_0 : i32, i32
  }
  func.func @transform_2(%arg0: i32, %arg1: i32) -> (i32, i32) {
    %c0_i32 = arith.constant 0 : i32
    %c0_i32_0 = arith.constant 0 : i32
    %c0_i32_1 = arith.constant 0 : i32
    return %c0_i32, %c0_i32_0 : i32, i32
  }
  func.func @transform_3(%arg0: i32, %arg1: i32) -> (i32, i32) {
    %c0_i32 = arith.constant 0 : i32
    %c0_i32_0 = arith.constant 0 : i32
    return %c0_i32, %arg1 : i32, i32
  }
  func.func @transform_4(%arg0: i32, %arg1: i32) -> (i32, i32) {
    %c0_i32 = arith.constant 0 : i32
    %c0_i32_0 = arith.constant 0 : i32
    return %c0_i32, %arg1 : i32, i32
  }
  func.func @transform_5(%arg0: i32, %arg1: i32) -> (i32, i32) {
    %c0_i32 = arith.constant 0 : i32
    return %arg0, %arg1 : i32, i32
  }
}

module attributes {stable_mosaic.version = 11 : i64} {
  func.func @_linear_residual_kernel(%arg0: i32, %arg1: i32, %arg2: i32, %arg3: memref<16x128xbf16, #tpu.memory_space<vmem>>, %arg4: memref<128x32xbf16, #tpu.memory_space<vmem>>, %arg5: memref<1x32xf32, #tpu.memory_space<vmem>>, %arg6: memref<16x32xbf16, #tpu.memory_space<vmem>>, %arg7: memref<16x32xbf16, #tpu.memory_space<vmem>>, %arg8: memref<16x32xf32, #tpu.memory_space<vmem>>) attributes {dimension_semantics = [#tpu.dimension_semantics<parallel>, #tpu.dimension_semantics<parallel>, #tpu.dimension_semantics<arbitrary>], iteration_bounds = array<i64: 1, 1, 1>, scalar_prefetch = 0 : i64, scratch_operands = 1 : i64, tpu.core_type = #tpu.core_type<tc>, window_params = [{transform_indices = @transform_0, window_bounds = array<i64: 16, 128>}, {transform_indices = @transform_1, window_bounds = array<i64: 128, 32>}, {transform_indices = @transform_2, window_bounds = array<i64: 1, 32>}, {transform_indices = @transform_3, window_bounds = array<i64: 16, 32>}, {transform_indices = @transform_4, window_bounds = array<i64: 16, 32>}]} {
    %c0_i32 = arith.constant 0 : i32
    %0 = arith.cmpi eq, %arg2, %c0_i32 : i32
    %1 = arith.extui %0 : i1 to i32
    %c0_i32_0 = arith.constant 0 : i32
    %2 = arith.cmpi ne, %1, %c0_i32_0 : i32
    scf.if %2 {
      %cst_10 = arith.constant 0.000000e+00 : f32
      %12 = vector.broadcast %cst_10 : f32 to vector<16x32xf32>
      %c0_11 = arith.constant 0 : index
      %c0_12 = arith.constant 0 : index
      %13 = vector.load %arg8[%c0_11, %c0_12] : memref<16x32xf32, #tpu.memory_space<vmem>>, vector<16x32xf32>
      tpu.vector_store %arg8[%c0_11, %c0_12], %12 {strides = array<i32>} : memref<16x32xf32, #tpu.memory_space<vmem>>, vector<16x32xf32>,
    } else {
    }
    %c0 = arith.constant 0 : index
    %c0_1 = arith.constant 0 : index
    %3 = vector.load %arg8[%c0, %c0_1] : memref<16x32xf32, #tpu.memory_space<vmem>>, vector<16x32xf32>
    %c0_2 = arith.constant 0 : index
    %c0_3 = arith.constant 0 : index
    %4 = vector.load %arg3[%c0_2, %c0_3] : memref<16x128xbf16, #tpu.memory_space<vmem>>, vector<16x128xbf16>
    %c0_4 = arith.constant 0 : index
    %c0_5 = arith.constant 0 : index
    %5 = vector.load %arg4[%c0_4, %c0_5] : memref<128x32xbf16, #tpu.memory_space<vmem>>, vector<128x32xbf16>
    %cst = arith.constant dense<0.000000e+00> : vector<16x32xf32>
    %6 = tpu.matmul %4, %5, %cst {dimension_numbers = #tpu.dot_dimension_numbers<[1], [0], [0], [1], [0, 0, 1, 1], [], []>} : vector<16x128xbf16>, vector<128x32xbf16>, vector<16x32xf32> -> vector<16x32xf32>
    %7 = arith.addf %3, %6 : vector<16x32xf32>
    %c0_6 = arith.constant 0 : index
    %c0_7 = arith.constant 0 : index
    %8 = vector.load %arg8[%c0_6, %c0_7] : memref<16x32xf32, #tpu.memory_space<vmem>>, vector<16x32xf32>
    tpu.vector_store %arg8[%c0_6, %c0_7], %7 {strides = array<i32>} : memref<16x32xf32, #tpu.memory_space<vmem>>, vector<16x32xf32>,
    %c0_i32_8 = arith.constant 0 : i32
    %9 = arith.cmpi eq, %arg2, %c0_i32_8 : i32
    %10 = arith.extui %9 : i1 to i32
    %c0_i32_9 = arith.constant 0 : i32
    %11 = arith.cmpi ne, %10, %c0_i32_9 : i32
    scf.if %11 {
      %c0_10 = arith.constant 0 : index
      %c0_11 = arith.constant 0 : index
      %12 = vector.load %arg8[%c0_10, %c0_11] : memref<16x32xf32, #tpu.memory_space<vmem>>, vector<16x32xf32>
      %c0_12 = arith.constant 0 : index
      %c0_13 = arith.constant 0 : index
      %13 = vector.load %arg5[%c0_12, %c0_13] : memref<1x32xf32, #tpu.memory_space<vmem>>, vector<1x32xf32>
      %14 = vector.broadcast %13 : vector<1x32xf32> to vector<16x32xf32>
      %15 = arith.addf %12, %14 : vector<16x32xf32>
      %c0_14 = arith.constant 0 : index
      %c0_15 = arith.constant 0 : index
      %16 = vector.load %arg6[%c0_14, %c0_15] : memref<16x32xbf16, #tpu.memory_space<vmem>>, vector<16x32xbf16>
      %17 = arith.extf %16 : vector<16x32xbf16> to vector<16x32xf32>
      %18 = arith.addf %15, %17 : vector<16x32xf32>
      %19 = arith.truncf %18 : vector<16x32xf32> to vector<16x32xbf16>
      %c0_16 = arith.constant 0 : index
      %c0_17 = arith.constant 0 : index
      %20 = vector.load %arg7[%c0_16, %c0_17] : memref<16x32xbf16, #tpu.memory_space<vmem>>, vector<16x32xbf16>
      tpu.vector_store %arg7[%c0_16, %c0_17], %19 {strides = array<i32>} : memref<16x32xbf16, #tpu.memory_space<vmem>>, vector<16x32xbf16>,
    } else {
    }
    return
  }
  func.func @transform_0(%arg0: i32, %arg1: i32, %arg2: i32) -> (i32, i32) {
    %c0_i32 = arith.constant 0 : i32
    return %arg0, %arg2 : i32, i32
  }
  func.func @transform_1(%arg0: i32, %arg1: i32, %arg2: i32) -> (i32, i32) {
    %c0_i32 = arith.constant 0 : i32
    return %arg2, %arg1 : i32, i32
  }
  func.func @transform_2(%arg0: i32, %arg1: i32, %arg2: i32) -> (i32, i32) {
    %c0_i32 = arith.constant 0 : i32
    %c0_i32_0 = arith.constant 0 : i32
    return %c0_i32, %arg1 : i32, i32
  }
  func.func @transform_3(%arg0: i32, %arg1: i32, %arg2: i32) -> (i32, i32) {
    %c0_i32 = arith.constant 0 : i32
    return %arg0, %arg1 : i32, i32
  }
  func.func @transform_4(%arg0: i32, %arg1: i32, %arg2: i32) -> (i32, i32) {
    %c0_i32 = arith.constant 0 : i32
    return %arg0, %arg1 : i32, i32
  }
}

module attributes {stable_mosaic.version = 11 : i64} {
  func.func @_layernorm_kernel(%arg0: i32, %arg1: memref<16x32xbf16, #tpu.memory_space<vmem>>, %arg2: memref<1x32xf32, #tpu.memory_space<vmem>>, %arg3: memref<1x32xf32, #tpu.memory_space<vmem>>, %arg4: memref<16x32xbf16, #tpu.memory_space<vmem>>) attributes {dimension_semantics = [#tpu.dimension_semantics<parallel>], iteration_bounds = array<i64: 1>, scalar_prefetch = 0 : i64, scratch_operands = 0 : i64, tpu.core_type = #tpu.core_type<tc>, window_params = [{transform_indices = @transform_0, window_bounds = array<i64: 16, 32>}, {pipeline_mode = #tpu.pipeline_mode<synchronous>, transform_indices = @transform_1, window_bounds = array<i64: 1, 32>}, {pipeline_mode = #tpu.pipeline_mode<synchronous>, transform_indices = @transform_2, window_bounds = array<i64: 1, 32>}, {transform_indices = @transform_3, window_bounds = array<i64: 16, 32>}]} {
    %c0 = arith.constant 0 : index
    %c0_0 = arith.constant 0 : index
    %0 = vector.load %arg1[%c0, %c0_0] : memref<16x32xbf16, #tpu.memory_space<vmem>>, vector<16x32xbf16>
    %1 = arith.extf %0 : vector<16x32xbf16> to vector<16x32xf32>
    %cst = arith.constant dense<0.000000e+00> : vector<16xf32>
    %2 = vector.multi_reduction <add>, %1, %cst [1] : vector<16x32xf32> to vector<16xf32>
    %3 = vector.shape_cast %2 : vector<16xf32> to vector<16x1xf32>
    %cst_1 = arith.constant 3.200000e+01 : f32
    %4 = vector.broadcast %cst_1 : f32 to vector<16x1xf32>
    %5 = arith.divf %3, %4 : vector<16x1xf32>
    %6 = vector.broadcast %5 : vector<16x1xf32> to vector<16x32xf32>
    %7 = arith.subf %1, %6 : vector<16x32xf32>
    %8 = arith.mulf %7, %7 : vector<16x32xf32>
    %cst_2 = arith.constant dense<0.000000e+00> : vector<16xf32>
    %9 = vector.multi_reduction <add>, %8, %cst_2 [1] : vector<16x32xf32> to vector<16xf32>
    %10 = vector.shape_cast %9 : vector<16xf32> to vector<16x1xf32>
    %cst_3 = arith.constant 3.200000e+01 : f32
    %11 = vector.broadcast %cst_3 : f32 to vector<16x1xf32>
    %12 = arith.divf %10, %11 : vector<16x1xf32>
    %cst_4 = arith.constant 9.99999974E-6 : f32
    %13 = vector.broadcast %cst_4 : f32 to vector<16x1xf32>
    %14 = arith.addf %12, %13 : vector<16x1xf32>
    %15 = math.rsqrt %14 : vector<16x1xf32>
    %16 = vector.broadcast %5 : vector<16x1xf32> to vector<16x32xf32>
    %17 = arith.subf %1, %16 : vector<16x32xf32>
    %18 = vector.broadcast %15 : vector<16x1xf32> to vector<16x32xf32>
    %19 = arith.mulf %17, %18 : vector<16x32xf32>
    %c0_5 = arith.constant 0 : index
    %c0_6 = arith.constant 0 : index
    %20 = vector.load %arg2[%c0_5, %c0_6] : memref<1x32xf32, #tpu.memory_space<vmem>>, vector<1x32xf32>
    %21 = vector.broadcast %20 : vector<1x32xf32> to vector<16x32xf32>
    %22 = arith.mulf %19, %21 : vector<16x32xf32>
    %c0_7 = arith.constant 0 : index
    %c0_8 = arith.constant 0 : index
    %23 = vector.load %arg3[%c0_7, %c0_8] : memref<1x32xf32, #tpu.memory_space<vmem>>, vector<1x32xf32>
    %24 = vector.broadcast %23 : vector<1x32xf32> to vector<16x32xf32>
    %25 = arith.addf %22, %24 : vector<16x32xf32>
    %26 = arith.truncf %25 : vector<16x32xf32> to vector<16x32xbf16>
    %c0_9 = arith.constant 0 : index
    %c0_10 = arith.constant 0 : index
    %27 = vector.load %arg4[%c0_9, %c0_10] : memref<16x32xbf16, #tpu.memory_space<vmem>>, vector<16x32xbf16>
    tpu.vector_store %arg4[%c0_9, %c0_10], %26 {strides = array<i32>} : memref<16x32xbf16, #tpu.memory_space<vmem>>, vector<16x32xbf16>,
    return
  }
  func.func @transform_0(%arg0: i32) -> (i32, i32) {
    %c0_i32 = arith.constant 0 : i32
    %c0_i32_0 = arith.constant 0 : i32
    return %arg0, %c0_i32 : i32, i32
  }
  func.func @transform_1(%arg0: i32) -> (i32, i32) {
    %c0_i32 = arith.constant 0 : i32
    %c0_i32_0 = arith.constant 0 : i32
    %c0_i32_1 = arith.constant 0 : i32
    return %c0_i32, %c0_i32_0 : i32, i32
  }
  func.func @transform_2(%arg0: i32) -> (i32, i32) {
    %c0_i32 = arith.constant 0 : i32
    %c0_i32_0 = arith.constant 0 : i32
    %c0_i32_1 = arith.constant 0 : i32
    return %c0_i32, %c0_i32_0 : i32, i32
  }
  func.func @transform_3(%arg0: i32) -> (i32, i32) {
    %c0_i32 = arith.constant 0 : i32
    %c0_i32_0 = arith.constant 0 : i32
    return %arg0, %c0_i32 : i32, i32
  }
}

module attributes {stable_mosaic.version = 11 : i64} {
  func.func @_ln_linear_kernel(%arg0: i32, %arg1: i32, %arg2: memref<2x32xbf16, #tpu.memory_space<vmem>>, %arg3: memref<1x32xf32, #tpu.memory_space<vmem>>, %arg4: memref<1x32xf32, #tpu.memory_space<vmem>>, %arg5: memref<32x16xbf16, #tpu.memory_space<vmem>>, %arg6: memref<1x16xf32, #tpu.memory_space<vmem>>, %arg7: memref<2x16xbf16, #tpu.memory_space<vmem>>) attributes {dimension_semantics = [#tpu.dimension_semantics<parallel>, #tpu.dimension_semantics<parallel>], iteration_bounds = array<i64: 1, 1>, scalar_prefetch = 0 : i64, scratch_operands = 0 : i64, tpu.core_type = #tpu.core_type<tc>, window_params = [{transform_indices = @transform_0, window_bounds = array<i64: 2, 32>}, {pipeline_mode = #tpu.pipeline_mode<synchronous>, transform_indices = @transform_1, window_bounds = array<i64: 1, 32>}, {pipeline_mode = #tpu.pipeline_mode<synchronous>, transform_indices = @transform_2, window_bounds = array<i64: 1, 32>}, {transform_indices = @transform_3, window_bounds = array<i64: 32, 16>}, {transform_indices = @transform_4, window_bounds = array<i64: 1, 16>}, {transform_indices = @transform_5, window_bounds = array<i64: 2, 16>}]} {
    %c0 = arith.constant 0 : index
    %c0_0 = arith.constant 0 : index
    %0 = vector.load %arg2[%c0, %c0_0] : memref<2x32xbf16, #tpu.memory_space<vmem>>, vector<2x32xbf16>
    %1 = arith.extf %0 : vector<2x32xbf16> to vector<2x32xf32>
    %cst = arith.constant dense<0.000000e+00> : vector<2xf32>
    %2 = vector.multi_reduction <add>, %1, %cst [1] : vector<2x32xf32> to vector<2xf32>
    %3 = vector.shape_cast %2 : vector<2xf32> to vector<2x1xf32>
    %cst_1 = arith.constant 3.200000e+01 : f32
    %4 = vector.broadcast %cst_1 : f32 to vector<2x1xf32>
    %5 = arith.divf %3, %4 : vector<2x1xf32>
    %6 = vector.broadcast %5 : vector<2x1xf32> to vector<2x32xf32>
    %7 = arith.subf %1, %6 : vector<2x32xf32>
    %8 = arith.mulf %7, %7 : vector<2x32xf32>
    %cst_2 = arith.constant dense<0.000000e+00> : vector<2xf32>
    %9 = vector.multi_reduction <add>, %8, %cst_2 [1] : vector<2x32xf32> to vector<2xf32>
    %10 = vector.shape_cast %9 : vector<2xf32> to vector<2x1xf32>
    %cst_3 = arith.constant 3.200000e+01 : f32
    %11 = vector.broadcast %cst_3 : f32 to vector<2x1xf32>
    %12 = arith.divf %10, %11 : vector<2x1xf32>
    %cst_4 = arith.constant 9.99999974E-6 : f32
    %13 = vector.broadcast %cst_4 : f32 to vector<2x1xf32>
    %14 = arith.addf %12, %13 : vector<2x1xf32>
    %15 = math.rsqrt %14 : vector<2x1xf32>
    %16 = vector.broadcast %5 : vector<2x1xf32> to vector<2x32xf32>
    %17 = arith.subf %1, %16 : vector<2x32xf32>
    %18 = vector.broadcast %15 : vector<2x1xf32> to vector<2x32xf32>
    %19 = arith.mulf %17, %18 : vector<2x32xf32>
    %c0_5 = arith.constant 0 : index
    %c0_6 = arith.constant 0 : index
    %20 = vector.load %arg3[%c0_5, %c0_6] : memref<1x32xf32, #tpu.memory_space<vmem>>, vector<1x32xf32>
    %21 = vector.broadcast %20 : vector<1x32xf32> to vector<2x32xf32>
    %22 = arith.mulf %19, %21 : vector<2x32xf32>
    %c0_7 = arith.constant 0 : index
    %c0_8 = arith.constant 0 : index
    %23 = vector.load %arg4[%c0_7, %c0_8] : memref<1x32xf32, #tpu.memory_space<vmem>>, vector<1x32xf32>
    %24 = vector.broadcast %23 : vector<1x32xf32> to vector<2x32xf32>
    %25 = arith.addf %22, %24 : vector<2x32xf32>
    %26 = arith.truncf %25 : vector<2x32xf32> to vector<2x32xbf16>
    %c0_9 = arith.constant 0 : index
    %c0_10 = arith.constant 0 : index
    %27 = vector.load %arg5[%c0_9, %c0_10] : memref<32x16xbf16, #tpu.memory_space<vmem>>, vector<32x16xbf16>
    %cst_11 = arith.constant dense<0.000000e+00> : vector<2x16xf32>
    %28 = tpu.matmul %26, %27, %cst_11 {dimension_numbers = #tpu.dot_dimension_numbers<[1], [0], [0], [1], [0, 0, 1, 1], [], []>} : vector<2x32xbf16>, vector<32x16xbf16>, vector<2x16xf32> -> vector<2x16xf32>
    %c0_12 = arith.constant 0 : index
    %c0_13 = arith.constant 0 : index
    %29 = vector.load %arg6[%c0_12, %c0_13] : memref<1x16xf32, #tpu.memory_space<vmem>>, vector<1x16xf32>
    %30 = vector.broadcast %29 : vector<1x16xf32> to vector<2x16xf32>
    %31 = arith.addf %28, %30 : vector<2x16xf32>
    %32 = arith.truncf %31 : vector<2x16xf32> to vector<2x16xbf16>
    %c0_14 = arith.constant 0 : index
    %c0_15 = arith.constant 0 : index
    %33 = vector.load %arg7[%c0_14, %c0_15] : memref<2x16xbf16, #tpu.memory_space<vmem>>, vector<2x16xbf16>
    tpu.vector_store %arg7[%c0_14, %c0_15], %32 {strides = array<i32>} : memref<2x16xbf16, #tpu.memory_space<vmem>>, vector<2x16xbf16>,
    return
  }
  func.func @transform_0(%arg0: i32, %arg1: i32) -> (i32, i32) {
    %c0_i32 = arith.constant 0 : i32
    %c0_i32_0 = arith.constant 0 : i32
    return %arg0, %c0_i32 : i32, i32
  }
  func.func @transform_1(%arg0: i32, %arg1: i32) -> (i32, i32) {
    %c0_i32 = arith.constant 0 : i32
    %c0_i32_0 = arith.constant 0 : i32
    %c0_i32_1 = arith.constant 0 : i32
    return %c0_i32, %c0_i32_0 : i32, i32
  }
  func.func @transform_2(%arg0: i32, %arg1: i32) -> (i32, i32) {
    %c0_i32 = arith.constant 0 : i32
    %c0_i32_0 = arith.constant 0 : i32
    %c0_i32_1 = arith.constant 0 : i32
    return %c0_i32, %c0_i32_0 : i32, i32
  }
  func.func @transform_3(%arg0: i32, %arg1: i32) -> (i32, i32) {
    %c0_i32 = arith.constant 0 : i32
    %c0_i32_0 = arith.constant 0 : i32
    return %c0_i32, %arg1 : i32, i32
  }
  func.func @transform_4(%arg0: i32, %arg1: i32) -> (i32, i32) {
    %c0_i32 = arith.constant 0 : i32
    %c0_i32_0 = arith.constant 0 : i32
    return %c0_i32, %arg1 : i32, i32
  }
  func.func @transform_5(%arg0: i32, %arg1: i32) -> (i32, i32) {
    %c0_i32 = arith.constant 0 : i32
    return %arg0, %arg1 : i32, i32
  }
}

</mosaic_0001>

<bundles_post_ra>
// kernel: text_encoder_forward.12
= control target key start
LH: loop header
LB: loop body
LE: loop exit
PB: predicated region body
PF: predicated region fallthrough
CT: control target
= control target key end

     0   :  { %vm25_vm0 = vcmask 261120   ;;  %v161_v5 = vmov 32.0   ;;  %vm129_vm8 = vcmask 781312   ;;  %s221_s0 = inlined_call_operand.vmem [shape: bf16[16,32], index: 0, kind: input, shape index: {}]   ;;  %s222_s1 = inlined_call_operand.vmem [shape: f32[1,32], index: 1, kind: input, shape index: {}]   ;;  %s223_s2 = inlined_call_operand.vmem [shape: f32[1,32], index: 2, kind: input, shape index: {}]   ;;  %s224_s4 = inlined_call_operand.vmem [shape: f32[1,96], index: 4, kind: input, shape index: {}]   ;;  %s225_s3 = inlined_call_operand.vmem [shape: bf16[32,96], index: 3, kind: input, shape index: {}]   ;;  %s226_s5 = inlined_call_operand.vmem [shape: bf16[16,96], index: 5, kind: output, shape index: {}]  }
   0x1   :  { %v148_v0 = vld [vmem:[%s221_s0] sm:$0xff]   ;;  %155 = vrcp.f32 %v161_v5  ;;  %v146_v22 = vld [vmem:[%s225_s3 + $0x8] sm:$0xff] }
   0x2   :  { %v149_v1 = vunpack.c.l.bf16 %v148_v0  ;;  %v150_v3 = vunpack.c.h.bf16 %v148_v0  ;;  %119 = vmatpush.bf16.msra.mxu0 %v146_v22  ;;  %v145_v24 = vld [vmem:[%s225_s3] sm:$0xff] }
   0x3   :  { %v152_v43 = vld [vmem:[%s222_s1] ss:$0 sm:$0xff] }
   0x4   :  { %v26_v2 = vsel %vm25_vm0, %v149_v1, 0.0  ;;  %v29_v4 = vsel %vm25_vm0, %v150_v3, 0.0  ;;  %v153_v48 = vld [vmem:[%s223_s2] ss:$0 sm:$0xff] }
   0x5   :  { %27 = vadd.xlane.f32.xlu0 %v26_v2  ;;  %v154_v53 = vld [vmem:[%s224_s4] ss:$0 sm:$0xff] }
   0x6   :  { %120 = vmatpush.bf16.msra.mxu0 %v145_v24 }
   0x7   :  { %v156_v6 = vpop.eup %155 }
   0x8   :  { %v33_v7 = vmul.f32 32.0, %v156_v6  ;;  %vm37_vm1 = vweird.f32 %v156_v6 }
   0xa   :  { %v34_v8 = vsub.f32 1.0, %v33_v7 }
   0xc   :  { %v35_v9 = vmul.f32 %v156_v6, %v34_v8 }
   0xd   :  { %30 = vadd.xlane.f32.xlu0 %v29_v4 }
   0xe   :  { %v36_v10 = vadd.f32 %v156_v6, %v35_v9 }
  0x10   :  { %v38_v11 = vsel %vm37_vm1, %v156_v6, %v36_v10 }
  0x78   :  { %v28_v12 = vpop.xlane.xlu0 %27 }
  0x79   :  { %v39_v13 = vmul.f32 %v38_v11, %v28_v12 }
  0x7b   :  { %v41_v14 = vsub.f32 %v149_v1, %v39_v13 }
  0x7d   :  { %v43_v15 = vmul.f32 %v41_v14, %v41_v14 }
  0x7f   :  { %v45_v16 = vsel %vm25_vm0, %v43_v15, 0.0 }
  0x80   :  { %46 = vadd.xlane.f32.xlu1 %v45_v16  ;;  %v31_v17 = vpop.xlane.xlu0 %30 }
  0x81   :  { %v40_v18 = vmul.f32 %v38_v11, %v31_v17 }
  0x83   :  { %v42_v19 = vsub.f32 %v150_v3, %v40_v18 }
  0x85   :  { %v44_v20 = vmul.f32 %v42_v19, %v42_v19 }
  0x87   :  { %v48_v21 = vsel %vm25_vm0, %v44_v20, 0.0 }
  0x88   :  { %49 = vadd.xlane.f32.xlu1 %v48_v21 }
  0xf3   :  { %v47_v23 = vpop.xlane.xlu1 %46 }
  0xf4   :  { %v51_v25 = vmul.f32 %v47_v23, %v38_v11 }
  0xf6   :  { %v53_v26 = vadd.f32 1e-05, %v51_v25 }
  0xf8   :  { %157 = vrsqrt.f32 %v53_v26  ;;  %vm61_vm3 = vweird.f32 %v53_v26 }
  0xfb   :  { %v50_v27 = vpop.xlane.xlu1 %49 }
  0xfc   :  { %v52_v28 = vmul.f32 %v50_v27, %v38_v11 }
  0xfe   :  { %v158_v29 = vpop.eup %157  ;;  %v54_v30 = vadd.f32 1e-05, %v52_v28 }
  0xff   :  { %v56_v31 = vmul.f32 %v158_v29, %v53_v26  ;;  %vm62_vm2 = vweird.f32 %v158_v29 }
 0x100   :  { %159 = vrsqrt.f32 %v54_v30  ;;  %vm63_vm4 = vmor %vm61_vm3, %vm62_vm2  ;;  %vm71_vm6 = vweird.f32 %v54_v30 }
 0x101   :  { %v57_v32 = vmul.f32 %v158_v29, %v56_v31 }
 0x103   :  { %v58_v33 = vmul.f32 0.5, %v57_v32 }
 0x105   :  { %v59_v34 = vsub.f32 1.5, %v58_v33 }
 0x106   :  { %v160_v35 = vpop.eup %159 }
 0x107   :  { %v60_v36 = vmul.f32 %v158_v29, %v59_v34  ;;  %v66_v37 = vmul.f32 %v160_v35, %v54_v30  ;;  %vm72_vm5 = vweird.f32 %v160_v35 }
 0x108   :  { %vm73_vm7 = vmor %vm71_vm6, %vm72_vm5 }
 0x109   :  { %v67_v38 = vmul.f32 %v160_v35, %v66_v37  ;;  %v64_v39 = vsel %vm63_vm4, %v158_v29, %v60_v36 }
 0x10a   :  { %v75_v42 = vmul.f32 %v64_v39, %v41_v14 }
 0x10b   :  { %v68_v40 = vmul.f32 0.5, %v67_v38 }
 0x10c   :  { %v81_v47 = vmul.f32 %v152_v43, %v75_v42 }
 0x10d   :  { %v69_v41 = vsub.f32 1.5, %v68_v40 }
 0x10e   :  { %v87_v50 = vadd.f32 %v153_v48, %v81_v47 }
 0x10f   :  { %v70_v44 = vmul.f32 %v160_v35, %v69_v41 }
 0x111   :  { %v74_v45 = vsel %vm73_vm7, %v160_v35, %v70_v44 }
 0x112   :  { %v76_v46 = vmul.f32 %v74_v45, %v42_v19 }
 0x114   :  { %v82_v49 = vmul.f32 %v152_v43, %v76_v46 }
 0x116   :  { %v88_v51 = vadd.f32 %v153_v48, %v82_v49 }
 0x118   :  { %v89_v52 = vpack.c.bf16 %v88_v51, %v87_v50 }
 0x11a   :  { %144 = vmatmul.msk.bf16.vlgmr.msra.gmra.mxu0 %vm25_vm0, %v89_v52 }
 0x197   :  { %v122_v54 = vpop.f32.mrf.mxu0 }
 0x198   :  { %v123_v55 = vadd.f32 %v154_v53, %v122_v54 }
 0x19a   :  { %v127_v56 = vpack.c.bf16 %v123_v55, %v123_v55 }
 0x19c   :  { %130 = vst.msk [vmem:[%s226_s5] sm:$0xf] %vm129_vm8, %v127_v56 }
 0x19f   :  { %v124_v57 = vpop.f32.mrf.mxu0 }
 0x1a0   :  { %v125_v58 = vadd.f32 %v154_v53, %v124_v57 }
 0x1a2   :  { %v128_v59 = vpack.c.bf16 %v125_v58, %v125_v58 }
 0x1a4   :  { %131 = vst.msk [vmem:[%s226_s5 + $0x4] sm:$0xf] %vm129_vm8, %v128_v59 }

// kernel: text_encoder_forward.15
= control target key start
LH: loop header
LB: loop body
LE: loop exit
PB: predicated region body
PF: predicated region fallthrough
CT: control target
= control target key end

     0   :  { %vm25_vm0 = vcmask 261120   ;;  %v187_v5 = vmov 32.0   ;;  %s244_s0 = inlined_call_operand.vmem [shape: bf16[16,32], index: 0, kind: input, shape index: {}]   ;;  %s245_s1 = inlined_call_operand.vmem [shape: f32[1,32], index: 1, kind: input, shape index: {}]   ;;  %s246_s2 = inlined_call_operand.vmem [shape: f32[1,32], index: 2, kind: input, shape index: {}]   ;;  %s247_s4 = inlined_call_operand.vmem [shape: f32[1,128], index: 4, kind: input, shape index: {}]   ;;  %s248_s3 = inlined_call_operand.vmem [shape: bf16[32,128], index: 3, kind: input, shape index: {}]   ;;  %s249_s5 = inlined_call_operand.vmem [shape: bf16[16,128], index: 5, kind: output, shape index: {}]  }
   0x1   :  { %v165_v0 = vld [vmem:[%s244_s0] sm:$0xff]   ;;  %177 = vrcp.f32 %v187_v5  ;;  %v163_v22 = vld [vmem:[%s248_s3 + $0x8] sm:$0xff] }
   0x2   :  { %v166_v1 = vunpack.c.l.bf16 %v165_v0  ;;  %v167_v3 = vunpack.c.h.bf16 %v165_v0  ;;  %119 = vmatpush.bf16.msra.mxu0 %v163_v22  ;;  %v162_v24 = vld [vmem:[%s248_s3] sm:$0xff] }
   0x3   :  { %v174_v43 = vld [vmem:[%s245_s1] ss:$0 sm:$0xff] }
   0x4   :  { %v26_v2 = vsel %vm25_vm0, %v166_v1, 0.0  ;;  %v29_v4 = vsel %vm25_vm0, %v167_v3, 0.0  ;;  %v175_v48 = vld [vmem:[%s246_s2] ss:$0 sm:$0xff] }
   0x5   :  { %27 = vadd.xlane.f32.xlu0 %v26_v2  ;;  %v176_v53 = vld [vmem:[%s247_s4] ss:$0 sm:$0xff] }
   0x6   :  { %120 = vmatpush.bf16.msra.mxu0 %v162_v24 }
   0x7   :  { %v178_v6 = vpop.eup %177 }
   0x8   :  { %v33_v7 = vmul.f32 32.0, %v178_v6  ;;  %vm37_vm1 = vweird.f32 %v178_v6 }
   0xa   :  { %v34_v8 = vsub.f32 1.0, %v33_v7 }
   0xc   :  { %v35_v9 = vmul.f32 %v178_v6, %v34_v8 }
   0xd   :  { %30 = vadd.xlane.f32.xlu0 %v29_v4 }
   0xe   :  { %v36_v10 = vadd.f32 %v178_v6, %v35_v9 }
  0x10   :  { %v38_v11 = vsel %vm37_vm1, %v178_v6, %v36_v10 }
  0x78   :  { %v28_v12 = vpop.xlane.xlu0 %27 }
  0x79   :  { %v39_v13 = vmul.f32 %v38_v11, %v28_v12 }
  0x7b   :  { %v41_v14 = vsub.f32 %v166_v1, %v39_v13 }
  0x7d   :  { %v43_v15 = vmul.f32 %v41_v14, %v41_v14 }
  0x7f   :  { %v45_v16 = vsel %vm25_vm0, %v43_v15, 0.0 }
  0x80   :  { %46 = vadd.xlane.f32.xlu1 %v45_v16  ;;  %v31_v17 = vpop.xlane.xlu0 %30 }
  0x81   :  { %v40_v18 = vmul.f32 %v38_v11, %v31_v17 }
  0x83   :  { %v42_v19 = vsub.f32 %v167_v3, %v40_v18 }
  0x85   :  { %v44_v20 = vmul.f32 %v42_v19, %v42_v19 }
  0x87   :  { %v48_v21 = vsel %vm25_vm0, %v44_v20, 0.0 }
  0x88   :  { %49 = vadd.xlane.f32.xlu1 %v48_v21 }
  0xf3   :  { %v47_v23 = vpop.xlane.xlu1 %46 }
  0xf4   :  { %v51_v25 = vmul.f32 %v47_v23, %v38_v11 }
  0xf6   :  { %v53_v26 = vadd.f32 1e-05, %v51_v25 }
  0xf8   :  { %179 = vrsqrt.f32 %v53_v26  ;;  %vm61_vm3 = vweird.f32 %v53_v26 }
  0xfb   :  { %v50_v27 = vpop.xlane.xlu1 %49 }
  0xfc   :  { %v52_v28 = vmul.f32 %v50_v27, %v38_v11 }
  0xfe   :  { %v180_v29 = vpop.eup %179  ;;  %v54_v30 = vadd.f32 1e-05, %v52_v28 }
  0xff   :  { %v56_v31 = vmul.f32 %v180_v29, %v53_v26  ;;  %vm62_vm2 = vweird.f32 %v180_v29 }
 0x100   :  { %181 = vrsqrt.f32 %v54_v30  ;;  %vm63_vm4 = vmor %vm61_vm3, %vm62_vm2  ;;  %vm71_vm6 = vweird.f32 %v54_v30 }
 0x101   :  { %v57_v32 = vmul.f32 %v180_v29, %v56_v31 }
 0x103   :  { %v58_v33 = vmul.f32 0.5, %v57_v32 }
 0x105   :  { %v59_v34 = vsub.f32 1.5, %v58_v33 }
 0x106   :  { %v182_v35 = vpop.eup %181 }
 0x107   :  { %v60_v36 = vmul.f32 %v180_v29, %v59_v34  ;;  %v66_v37 = vmul.f32 %v182_v35, %v54_v30  ;;  %vm72_vm5 = vweird.f32 %v182_v35 }
 0x108   :  { %vm73_vm7 = vmor %vm71_vm6, %vm72_vm5 }
 0x109   :  { %v67_v38 = vmul.f32 %v182_v35, %v66_v37  ;;  %v64_v39 = vsel %vm63_vm4, %v180_v29, %v60_v36 }
 0x10a   :  { %v75_v42 = vmul.f32 %v64_v39, %v41_v14 }
 0x10b   :  { %v68_v40 = vmul.f32 0.5, %v67_v38 }
 0x10c   :  { %v81_v47 = vmul.f32 %v174_v43, %v75_v42 }
 0x10d   :  { %v69_v41 = vsub.f32 1.5, %v68_v40 }
 0x10e   :  { %v87_v50 = vadd.f32 %v175_v48, %v81_v47 }
 0x10f   :  { %v70_v44 = vmul.f32 %v182_v35, %v69_v41 }
 0x111   :  { %v74_v45 = vsel %vm73_vm7, %v182_v35, %v70_v44 }
 0x112   :  { %v76_v46 = vmul.f32 %v74_v45, %v42_v19 }
 0x114   :  { %v82_v49 = vmul.f32 %v174_v43, %v76_v46 }
 0x116   :  { %v88_v51 = vadd.f32 %v175_v48, %v82_v49 }
 0x118   :  { %v89_v52 = vpack.c.bf16 %v88_v51, %v87_v50 }
 0x11a   :  { %161 = vmatmul.msk.bf16.vlgmr.msra.gmra.mxu0 %vm25_vm0, %v89_v52 }
 0x197   :  { %v122_v54 = vpop.f32.mrf.mxu0 }
 0x198   :  { %v123_v55 = vadd.f32 %v176_v53, %v122_v54 }
 0x19a   :  { %v127_v56 = vmul.f32 %v123_v55, %v123_v55 }
 0x19c   :  { %v129_v57 = vmul.f32 %v127_v56, %v123_v55 }
 0x19e   :  { %v131_v58 = vmul.f32 0.044715, %v129_v57 }
 0x19f   :  { %v124_v59 = vpop.f32.mrf.mxu0 }
 0x1a0   :  { %v133_v60 = vadd.f32 %v131_v58, %v123_v55  ;;  %v125_v61 = vadd.f32 %v176_v53, %v124_v59 }
 0x1a2   :  { %v135_v62 = vmul.f32 0.7978846, %v133_v60  ;;  %v128_v63 = vmul.f32 %v125_v61, %v125_v61 }
 0x1a4   :  { %v130_v0 = vmul.f32 %v128_v63, %v125_v61  ;;  %183 = vtanh.f32 %v135_v62 }
 0x1a6   :  { %v132_v1 = vmul.f32 0.044715, %v130_v0 }
 0x1a8   :  { %v134_v2 = vadd.f32 %v132_v1, %v125_v61 }
 0x1aa   :  { %v136_v3 = vmul.f32 0.7978846, %v134_v2  ;;  %v184_v4 = vpop.eup %183 }
 0x1ab   :  { %v139_v5 = vadd.f32 1.0, %v184_v4 }
 0x1ac   :  { %185 = vtanh.f32 %v136_v3 }
 0x1ad   :  { %v141_v7 = vmul.f32 0.5, %v139_v5 }
 0x1af   :  { %v143_v10 = vmul.f32 %v141_v7, %v123_v55 }
 0x1b2   :  { %v186_v6 = vpop.eup %185 }
 0x1b3   :  { %v140_v8 = vadd.f32 1.0, %v186_v6 }
 0x1b5   :  { %v142_v9 = vmul.f32 0.5, %v140_v8 }
 0x1b7   :  { %v144_v11 = vmul.f32 %v142_v9, %v125_v61 }
 0x1b9   :  { %v171_v12 = vpack.c.bf16 %v144_v11, %v143_v10 }
 0x1bb   :  { %172 = vst [vmem:[%s249_s5] sm:$0xff] %v171_v12  }

// kernel: text_encoder_forward.14
= control target key start
LH: loop header
LB: loop body
LE: loop exit
PB: predicated region body
PF: predicated region fallthrough
CT: control target
= control target key end

     0   :  { %vm22_vm0 = vcmask 261120   ;;  %v120_v1 = vmov 0.0   ;;  %vm91_vm1 = vcmask 257024   ;;  %s172_s1 = inlined_call_operand.vmem [shape: bf16[32,32], index: 1, kind: input, shape index: {}]   ;;  %s173_s2 = inlined_call_operand.vmem [shape: f32[1,32], index: 2, kind: input, shape index: {}]   ;;  %s174_s0 = inlined_call_operand.vmem [shape: bf16[16,32], index: 0, kind: input, shape index: {}]   ;;  %s175_s3 = inlined_call_operand.vmem [shape: bf16[16,32], index: 3, kind: input, shape index: {}]   ;;  %s176_s4 = inlined_call_operand.vmem [shape: bf16[16,32], index: 4, kind: output, shape index: {}]  }
   0x1   :  { %v113_v0 = vld [vmem:[%s172_s1 + $0x8] sm:$0xff]  ;;  %23 = vst.msk [vmem:[#allocation2] sm:$0xff] %vm22_vm0, %v120_v1  ;;  %v112_v2 = vld [vmem:[%s172_s1] sm:$0xff] }
   0x2   :  { %24 = vst.msk [vmem:[#allocation2 + $0x8] sm:$0xff] %vm22_vm0, %v120_v1  ;;  %60 = vmatpush.bf16.msra.mxu0 %v113_v0  ;;  %v111_v3 = vld [vmem:[%s174_s0] sm:$0xff] }
   0x3   :  { %v115_v7 = vld [vmem:[%s175_s3] sm:$0xff]  }
   0x4   :  { %v119_v9 = vld [vmem:[%s173_s2] ss:$0 sm:$0xff]  ;;  %v116_v11 = vunpack.c.l.bf16 %v115_v7  ;;  %v117_v17 = vunpack.c.h.bf16 %v115_v7 }
   0x6   :  { %61 = vmatpush.bf16.msra.mxu0 %v112_v2 }
   0x8   :  { %v25_v4 = vld [vmem:[#allocation2] sm:$0xff] }
   0x9   :  { %110 = vmatmul.msk.bf16.vlgmr.msra.gmra.mxu0 %vm22_vm0, %v111_v3  ;;  %v26_v8 = vld [vmem:[#allocation2 + $0x8] sm:$0xff] }
  0x86   :  { %v63_v5 = vpop.f32.mrf.mxu0 }
  0x87   :  { %v68_v6 = vadd.f32 %v63_v5, %v25_v4 }
  0x89   :  { %70 = vst.msk [vmem:[#allocation2] sm:$0xff] %vm22_vm0, %v68_v6 }
  0x8e   :  { %v65_v10 = vpop.f32.mrf.mxu0 }
  0x8f   :  { %v69_v12 = vadd.f32 %v65_v10, %v26_v8 }
  0x90   :  { %v75_v13 = vld [vmem:[#allocation2] sm:$0xff] }
  0x91   :  { %v81_v14 = vadd.f32 %v119_v9, %v75_v13  ;;  %71 = vst.msk [vmem:[#allocation2 + $0x8] sm:$0xff] %vm22_vm0, %v69_v12 }
  0x93   :  { %v87_v15 = vadd.f32 %v116_v11, %v81_v14 }
  0x95   :  { %v89_v16 = vpack.c.bf16 %v87_v15, %v87_v15 }
  0x97   :  { %92 = vst.msk [vmem:[%s176_s4] sm:$0xf] %vm91_vm1, %v89_v16 }
  0x98   :  { %v76_v18 = vld [vmem:[#allocation2 + $0x8] sm:$0xff] }
  0x99   :  { %v82_v19 = vadd.f32 %v119_v9, %v76_v18 }
  0x9b   :  { %v88_v20 = vadd.f32 %v117_v17, %v82_v19 }
  0x9d   :  { %v90_v21 = vpack.c.bf16 %v88_v20, %v88_v20 }
  0x9f   :  { %93 = vst.msk [vmem:[%s176_s4 + $0x4] sm:$0xf] %vm91_vm1, %v90_v21 }

// kernel: text_encoder_forward.13
= control target key start
LH: loop header
LB: loop body
LE: loop exit
PB: predicated region body
PF: predicated region fallthrough
CT: control target
= control target key end

     0   :  { %s370_s6 = smov 0   ;;  %s400_s0 = inlined_call_operand.vmem [shape: bf16[2,8,96], index: 0, kind: input, shape index: {}]   ;;  %s401_s1 = inlined_call_operand.vmem [shape: bf16[2,8,32], index: 1, kind: output, shape index: {}]  }
   0x1 LB: > { %s311_s7 = sadd.s32 4294967295, %s352_s6   ;;  %p315_p0 = scmp.ge.s32.totalorder %s352_s6, 1  ;;  %s352_s6 = sphi %s370_s6, %s11_s6  }
   0x2   : > { %p86_p1 = scmp.lt.s32.totalorder %s352_s6, 3 }
   0x4   : > { %p87_p2 = pnand %p315_p0, %p86_p1 }
   0x5   : > { %p104_p3 = scmp.lt.s32.totalorder (!%p87_p2), %s311_s7, 1  ;;  %s354_s12 = smov (!%p87_p2), 80  }
   0x6   : > { %90 = sbr.rel (%p87_p2) target bundleno = 757 (0x2f5), region = 24  ;;  %s355_s13 = smov (!%p87_p2), 96  }
   0x7   : > { %s356_s14 = smov (!%p87_p2), 112   ;;  %s357_s15 = smov (!%p87_p2), 48  }
   0x8   : > { %s358_s16 = smov (!%p87_p2), 64   ;;  %s359_s20 = smov (!%p87_p2), 16  }
   0xb   : > { %s403_s7 = smov (!%p104_p3, %s311_s7), 1  ;;  %vm127_vm0 = vcmask 130048   ;;  %v113_v17 = vlaneseq  ;;  %vm148_vm2 = vcmask 64512   ;;  %vm166_vm3 = vcmask 1043456  }
   0xc   : > { %s316_s8 = sshll.u32 %s403_s7, 2  ;;  %vm184_vm4 = vcmask 125952   ;;  %vm256_vm5 = vcmask 257152  }
   0xd   : > { %s107_s11 = scalar_lea.vmem %s400_s0, %s316_s8  ;;  %v114_v18 = vshrl.u32 %v113_v17, 7  ;;  %v116_v19 = vand.u32 127, %v113_v17  ;;  %s111_s19 = scalar_lea.vmem %s401_s1, %s316_s8 }
   0xe   : > { %v186_v0 = vld [vmem:[%s107_s11] sm:$0xf] }
   0xf   : > { %v118_v1 = vld [vmem:[%s107_s11] sm:$0xf]  ;;  %v194_v2 = vunpack.c.l.b16 %v186_v0  ;;  %v187_v3 = vunpack.c.l.bf16 %v186_v0  ;;  %vm117_vm1 = vcmp.le.s32.totalorder %v116_v19, %v114_v18 }
  0x10   : > { %v123_v4 = vunpack.c.l.b16 %v118_v1  ;;  %v119_v9 = vunpack.c.l.bf16 %v118_v1 }
  0x11   : > { %v195_v5 = vpack.c.b16 %v194_v2, %v194_v2  ;;  %v188_v7 = vmul.f32 0.25, %v187_v3 }
  0x12   : > { %v124_v6 = vpack.c.b16 %v123_v4, %v123_v4  ;;  %v120_v14 = vmul.f32 0.25, %v119_v9 }
  0x13   : > { %196 = vrot.lane.b32.xlu0 %v195_v5, %s354_s12  ;;  %v189_v8 = vpack.c.bf16 %v188_v7, %v188_v7 }
  0x14   : > { %125 = vrot.lane.b32.xlu1 %v124_v6, %s355_s13  ;;  %v121_v15 = vpack.c.bf16 %v120_v14, %v120_v14 }
  0x1b   : > { %191 = vrot.lane.b32.xlu0 %v189_v8, %s356_s14 }
  0x23   : > { %230 = vrot.lane.b32.xlu0 %v195_v5, %s357_s15 }
  0x2b   : > { %161 = vrot.lane.b32.xlu0 %v124_v6, %s358_s16 }
  0x85   : > { %v197_v10 = vpop.permute.xlu0 %196 }
  0x86   : > { %v126_v11 = vpop.permute.xlu1 %125  ;;  %v202_v13 = vsel %vm127_vm0, %v197_v10, 0 }
  0x87   : > { %v132_v12 = vsel %vm127_vm0, %v126_v11, 0  ;;  %211 = vmatpush.bf16.xpose.msra.mxu2 %v202_v13 }
  0x88   : > { %141 = vmatpush.bf16.xpose.msra.mxu0 %v132_v12 }
  0x8d   : > { %v192_v16 = vpop.permute.xlu0 %191 }
  0x8e   : > { %320 = vmatmul.msk.bf16.vlgmr.msra.gmra.mxu2 %vm127_vm0, %v192_v16 }
  0x8f   : > { %318 = vmatmul.msk.bf16.vlgmr.msra.gmra.mxu0 %vm127_vm0, %v121_v15 }
  0x95   : > { %v231_v38 = vpop.permute.xlu0 %230 }
  0x96   : > { %v236_v39 = vsel %vm166_vm3, %v231_v38, 0 }
  0x97   : > { %245 = vmatpush.bf16.msra.mxu3 %v236_v39 }
  0x9d   : > { %v162_v40 = vpop.permute.xlu0 %161 }
  0x9e   : > { %v168_v41 = vsel %vm166_vm3, %v162_v40, 0 }
  0x9f   : > { %177 = vmatpush.bf16.msra.mxu1 %v168_v41 }
 0x10c   : > { %v143_v20 = vpop.f32.mrf.mxu0 }
 0x10d   : > { %v147_v21 = vsel %vm117_vm1, %v143_v20, -1e+30 }
 0x10e   : > { %v149_v22 = vsel %vm148_vm2, %v147_v21, -inf }
 0x10f   : > { %150 = vmax.xlane.f32.xlu2 %v149_v22 }
 0x111   : > { %v213_v23 = vpop.f32.mrf.mxu2 }
 0x112   : > { %v217_v24 = vsel %vm117_vm1, %v213_v23, -1e+30 }
 0x113   : > { %v218_v25 = vsel %vm148_vm2, %v217_v24, -inf }
 0x114   : > { %v145_v26 = vpop.f32.mrf.mxu0  ;;  %219 = vmax.xlane.f32.xlu1 %v218_v25 }
 0x119   : > { %v215_v27 = vpop.f32.mrf.mxu2 }
 0x182   : > { %v151_v28 = vpop.xlane.xlu2 %150 }
 0x183   : > { %v152_v31 = vsub.f32 %v147_v21, %v151_v28 }
 0x185   : > { %v153_v33 = vmul.f32 1.442695, %v152_v31 }
 0x187   : > { %v220_v29 = vpop.xlane.xlu1 %219 }
 0x188   : > { %v221_v30 = vsub.f32 %v217_v24, %v220_v29 }
 0x18a   : > { %v222_v32 = vmul.f32 1.442695, %v221_v30 }
 0x18c   : > { %338 = vpow2.f32 %v222_v32 }
 0x18d   : > { %340 = vpow2.f32 %v153_v33 }
 0x192   : > { %v339_v34 = vpop.eup %338 }
 0x193   : > { %v224_v35 = vsel %vm148_vm2, %v339_v34, 0.0  ;;  %v341_v36 = vpop.eup %340 }
 0x194   : > { %225 = vadd.xlane.f32.xlu2 %v224_v35  ;;  %v155_v37 = vsel %vm148_vm2, %v341_v36, 0.0 }
 0x19c   : > { %156 = vadd.xlane.f32.xlu2 %v155_v37 }
 0x207   : > { %v226_v42 = vpop.xlane.xlu2 %225 }
 0x208   : > { %342 = vrcp.f32 %v226_v42 }
 0x20e   : > { %v343_v43 = vpop.eup %342 }
 0x20f   : > { %v157_v44 = vpop.xlane.xlu2 %156  ;;  %v228_v45 = vmul.f32 %v343_v43, %v339_v34 }
 0x210   : > { %344 = vrcp.f32 %v157_v44 }
 0x211   : > { %v229_v46 = vpack.c.bf16 %v228_v45, %v228_v45 }
 0x213   : > { %321 = vmatmul.msk.bf16.vlgmr.msra.gmra.mxu3 %vm148_vm2, %v229_v46 }
 0x216   : > { %v345_v47 = vpop.eup %344 }
 0x217   : > { %v159_v48 = vmul.f32 %v345_v47, %v341_v36 }
 0x219   : > { %v160_v49 = vpack.c.bf16 %v159_v48, %v159_v48 }
 0x21b   : > { %319 = vmatmul.msk.bf16.vlgmr.msra.gmra.mxu1 %vm148_vm2, %v160_v49 }
 0x296   : > { %v247_v50 = vpop.f32.mrf.mxu3 }
 0x297   : > { %v251_v51 = vpack.c.bf16 %v247_v50, %v247_v50 }
 0x298   : > { %v179_v52 = vpop.f32.mrf.mxu1 }
 0x299   : > { %v183_v53 = vpack.c.bf16 %v179_v52, %v179_v52  ;;  %253 = vrot.lane.b32.xlu2 %v251_v51, %s359_s20 }
 0x29b   : > { %185 = vst.msk [vmem:[%s111_s19] sm:$0xf] %vm184_vm4, %v183_v53 }
 0x29e   : > { %v249_v54 = vpop.f32.mrf.mxu3 }
 0x2a0   : > { %v181_v55 = vpop.f32.mrf.mxu1 }
 0x2f3   : > { %v254_v56 = vpop.permute.xlu2 %253 }
 0x2f4   : > { %257 = vst.msk [vmem:[%s111_s19] sm:$0xf] %vm256_vm5, %v254_v56 }
 0x2f5 PF: > { %s11_s6 = sadd.s32 1, %s352_s6  }
 0x2f6   : > { %p8_p4 = scmp.ge.s32.totalorder %s11_s6, 4  }
 0x2f8   :  { %10 = sbr.rel (!%p8_p4) target bundleno = 1 (0x1), region = 54 }

// kernel: text_encoder_forward.16
= control target key start
LH: loop header
LB: loop body
LE: loop exit
PB: predicated region body
PF: predicated region fallthrough
CT: control target
= control target key end

     0   :  { %vm21_vm0 = vcmask 261120   ;;  %v194_v2 = vmov 0.0   ;;  %vm136_vm1 = vcmask 257024   ;;  %s263_s1 = inlined_call_operand.vmem [shape: bf16[128,32], index: 1, kind: input, shape index: {}]   ;;  %s264_s2 = inlined_call_operand.vmem [shape: f32[1,32], index: 2, kind: input, shape index: {}]   ;;  %s265_s0 = inlined_call_operand.vmem [shape: bf16[16,128], index: 0, kind: input, shape index: {}]   ;;  %s266_s3 = inlined_call_operand.vmem [shape: bf16[16,32], index: 3, kind: input, shape index: {}]   ;;  %s267_s4 = inlined_call_operand.vmem [shape: bf16[16,32], index: 4, kind: output, shape index: {}]  }
   0x1   :  { %v187_v0 = vld [vmem:[%s263_s1 + $0x38] sm:$0xff]  ;;  %v186_v1 = vld [vmem:[%s263_s1 + $0x30] sm:$0xff]  ;;  %22 = vst.msk [vmem:[#allocation2] sm:$0xff] %vm21_vm0, %v194_v2  ;;  %v185_v3 = vld [vmem:[%s263_s1 + $0x28] sm:$0xff] }
   0x2   :  { %98 = vmatpush.bf16.msra.mxu0 %v187_v0  ;;  %23 = vst.msk [vmem:[#allocation2 + $0x8] sm:$0xff] %vm21_vm0, %v194_v2  ;;  %v184_v4 = vld [vmem:[%s263_s1 + $0x20] sm:$0xff]  ;;  %v183_v5 = vld [vmem:[%s263_s1 + $0x18] sm:$0xff]  ;;  %v182_v6 = vld [vmem:[%s263_s1 + $0x10] sm:$0xff] }
   0x3   :  { %v181_v7 = vld [vmem:[%s263_s1 + $0x8] sm:$0xff]  ;;  %v180_v8 = vld [vmem:[%s263_s1] sm:$0xff] }
   0x4   :  { %v179_v9 = vld [vmem:[%s265_s0] sm:$0xff] }
   0x5   :  { %v189_v13 = vld [vmem:[%s266_s3] sm:$0xff]  }
   0x6   :  { %99 = vmatpush.bf16.msra.mxu0 %v186_v1  ;;  %v193_v15 = vld [vmem:[%s264_s2] ss:$0 sm:$0xff]  ;;  %v190_v17 = vunpack.c.l.bf16 %v189_v13  ;;  %v191_v23 = vunpack.c.h.bf16 %v189_v13 }
   0x8   :  { %v24_v10 = vld [vmem:[#allocation2] sm:$0xff] }
   0x9   :  { %v25_v14 = vld [vmem:[#allocation2 + $0x8] sm:$0xff] }
   0xa   :  { %100 = vmatpush.bf16.msra.mxu0 %v185_v3 }
   0xe   :  { %101 = vmatpush.bf16.msra.mxu0 %v184_v4 }
  0x12   :  { %102 = vmatpush.bf16.msra.mxu0 %v183_v5 }
  0x16   :  { %103 = vmatpush.bf16.msra.mxu0 %v182_v6 }
  0x1a   :  { %104 = vmatpush.bf16.msra.mxu0 %v181_v7 }
  0x1e   :  { %105 = vmatpush.bf16.msra.mxu0 %v180_v8 }
  0x21   :  { %106 = vmatmul.bf16.vlgmr.msra.gmra.mxu0 %v179_v9 }
  0x9e   :  { %v107_v11 = vpop.f32.mrf.mxu0 }
  0x9f   :  { %v112_v12 = vadd.f32 %v107_v11, %v24_v10 }
  0xa1   :  { %115 = vst.msk [vmem:[#allocation2] sm:$0xff] %vm21_vm0, %v112_v12 }
  0xa6   :  { %v109_v16 = vpop.f32.mrf.mxu0 }
  0xa7   :  { %v113_v18 = vadd.f32 %v109_v16, %v25_v14 }
  0xa8   :  { %v120_v19 = vld [vmem:[#allocation2] sm:$0xff] }
  0xa9   :  { %v126_v20 = vadd.f32 %v193_v15, %v120_v19  ;;  %116 = vst.msk [vmem:[#allocation2 + $0x8] sm:$0xff] %vm21_vm0, %v113_v18 }
  0xab   :  { %v132_v21 = vadd.f32 %v190_v17, %v126_v20 }
  0xad   :  { %v134_v22 = vpack.c.bf16 %v132_v21, %v132_v21 }
  0xaf   :  { %137 = vst.msk [vmem:[%s267_s4] sm:$0xf] %vm136_vm1, %v134_v22 }
  0xb0   :  { %v121_v24 = vld [vmem:[#allocation2 + $0x8] sm:$0xff] }
  0xb1   :  { %v127_v25 = vadd.f32 %v193_v15, %v121_v24 }
  0xb3   :  { %v133_v26 = vadd.f32 %v191_v23, %v127_v25 }
  0xb5   :  { %v135_v27 = vpack.c.bf16 %v133_v26, %v133_v26 }
  0xb7   :  { %138 = vst.msk [vmem:[%s267_s4 + $0x4] sm:$0xf] %vm136_vm1, %v135_v27 }

// kernel: text_encoder_forward.22
= control target key start
LH: loop header
LB: loop body
LE: loop exit
PB: predicated region body
PF: predicated region fallthrough
CT: control target
= control target key end

     0   :  { %vm19_vm0 = vcmask 261120   ;;  %s188_s0 = inlined_call_operand.vmem [shape: bf16[16,32], index: 0, kind: input, shape index: {}]   ;;  %s189_s1 = inlined_call_operand.vmem [shape: f32[1,32], index: 1, kind: input, shape index: {}]   ;;  %s190_s2 = inlined_call_operand.vmem [shape: f32[1,32], index: 2, kind: input, shape index: {}]   ;;  %s191_s3 = inlined_call_operand.hbm [shape: bf16[16,32], index: 3, kind: output, shape index: {}]  }
   0x1   :  { %v107_v0 = vld [vmem:[%s188_s0] sm:$0xff]  }
   0x2   :  { %v108_v1 = vunpack.c.l.bf16 %v107_v0 }
   0x3   :  { %8 = vsyncpa [#allocation3], 0  ;;  %v109_v3 = vunpack.c.h.bf16 %v107_v0  ;;  %v148_v5 = vmov 32.0   ;;  %v114_v36 = vld [vmem:[%s189_s1] ss:$0 sm:$0xff]  ;;  %vm85_vm7 = vcmask 257024  }
   0x4   :  { %v20_v2 = vsel %vm19_vm0, %v108_v1, 0.0  ;;  %116 = vrcp.f32 %v148_v5  ;;  %v115_v39 = vld [vmem:[%s190_s2] ss:$0 sm:$0xff]  ;;  %s149_s1 = smov [#allocation2]   ;;  %s94_s2 = sshll.u32 %s191_s3, 4  ;;  %s95_s2 = int_to_ptr.hbm [resolvable:$true] %s94_s2 }
   0x5   :  { %21 = vadd.xlane.f32.xlu0 %v20_v2  ;;  %v23_v4 = vsel %vm19_vm0, %v109_v3, 0.0  ;;  %s92_s17 = sshll.u32 %s149_s1, 4  ;;  %s150_s20 = smov 64   ;;  %s93_s17 = int_to_ptr.vmem [resolvable:$true] %s92_s17 }
   0x6   :  { %s151_s21 = smov 4  }
   0xa   :  { %v117_v6 = vpop.eup %116 }
   0xb   :  { %v27_v7 = vmul.f32 32.0, %v117_v6  ;;  %vm31_vm1 = vweird.f32 %v117_v6 }
   0xd   :  { %24 = vadd.xlane.f32.xlu0 %v23_v4  ;;  %v28_v8 = vsub.f32 1.0, %v27_v7 }
   0xf   :  { %v29_v9 = vmul.f32 %v117_v6, %v28_v8 }
  0x11   :  { %v30_v10 = vadd.f32 %v117_v6, %v29_v9 }
  0x13   :  { %v32_v11 = vsel %vm31_vm1, %v117_v6, %v30_v10 }
  0x78   :  { %v22_v12 = vpop.xlane.xlu0 %21 }
  0x79   :  { %v33_v13 = vmul.f32 %v32_v11, %v22_v12 }
  0x7b   :  { %v35_v14 = vsub.f32 %v108_v1, %v33_v13 }
  0x7d   :  { %v37_v15 = vmul.f32 %v35_v14, %v35_v14 }
  0x7f   :  { %v39_v16 = vsel %vm19_vm0, %v37_v15, 0.0 }
  0x80   :  { %40 = vadd.xlane.f32.xlu1 %v39_v16  ;;  %v25_v17 = vpop.xlane.xlu0 %24 }
  0x81   :  { %v34_v18 = vmul.f32 %v32_v11, %v25_v17 }
  0x83   :  { %v36_v19 = vsub.f32 %v109_v3, %v34_v18 }
  0x85   :  { %v38_v20 = vmul.f32 %v36_v19, %v36_v19 }
  0x87   :  { %v42_v21 = vsel %vm19_vm0, %v38_v20, 0.0 }
  0x88   :  { %43 = vadd.xlane.f32.xlu1 %v42_v21 }
  0xf3   :  { %v41_v22 = vpop.xlane.xlu1 %40 }
  0xf4   :  { %v45_v23 = vmul.f32 %v41_v22, %v32_v11 }
  0xf6   :  { %v47_v24 = vadd.f32 1e-05, %v45_v23 }
  0xf8   :  { %118 = vrsqrt.f32 %v47_v24  ;;  %vm55_vm3 = vweird.f32 %v47_v24 }
  0xfb   :  { %v44_v25 = vpop.xlane.xlu1 %43 }
  0xfc   :  { %v46_v26 = vmul.f32 %v44_v25, %v32_v11 }
  0xfe   :  { %v119_v27 = vpop.eup %118  ;;  %v48_v28 = vadd.f32 1e-05, %v46_v26 }
  0xff   :  { %v50_v29 = vmul.f32 %v119_v27, %v47_v24  ;;  %vm56_vm2 = vweird.f32 %v119_v27 }
 0x100   :  { %120 = vrsqrt.f32 %v48_v28  ;;  %vm57_vm4 = vmor %vm55_vm3, %vm56_vm2  ;;  %vm65_vm6 = vweird.f32 %v48_v28 }
 0x101   :  { %v51_v30 = vmul.f32 %v119_v27, %v50_v29 }
 0x103   :  { %v52_v31 = vmul.f32 0.5, %v51_v30 }
 0x105   :  { %v53_v32 = vsub.f32 1.5, %v52_v31 }
 0x106   :  { %v121_v33 = vpop.eup %120 }
 0x107   :  { %v54_v34 = vmul.f32 %v119_v27, %v53_v32  ;;  %v60_v35 = vmul.f32 %v121_v33, %v48_v28  ;;  %vm66_vm5 = vweird.f32 %v121_v33 }
 0x108   :  { %vm67_vm8 = vmor %vm65_vm6, %vm66_vm5 }
 0x109   :  { %v58_v37 = vsel %vm57_vm4, %v119_v27, %v54_v34  ;;  %v61_v38 = vmul.f32 %v121_v33, %v60_v35 }
 0x10a   :  { %v69_v40 = vmul.f32 %v58_v37, %v35_v14 }
 0x10b   :  { %v62_v41 = vmul.f32 0.5, %v61_v38 }
 0x10c   :  { %v75_v42 = vmul.f32 %v114_v36, %v69_v40 }
 0x10d   :  { %v63_v43 = vsub.f32 1.5, %v62_v41 }
 0x10e   :  { %v81_v44 = vadd.f32 %v115_v39, %v75_v42 }
 0x10f   :  { %v64_v45 = vmul.f32 %v121_v33, %v63_v43 }
 0x110   :  { %v83_v46 = vpack.c.bf16 %v81_v44, %v81_v44 }
 0x111   :  { %v68_v47 = vsel %vm67_vm8, %v121_v33, %v64_v45 }
 0x112   :  { %v70_v48 = vmul.f32 %v68_v47, %v36_v19  ;;  %86 = vst.msk [vmem:[#allocation2] sm:$0xf] %vm85_vm7, %v83_v46 }
 0x114   :  { %v76_v49 = vmul.f32 %v114_v36, %v70_v48 }
 0x116   :  { %v82_v50 = vadd.f32 %v115_v39, %v76_v49 }
 0x118   :  { %v84_v51 = vpack.c.bf16 %v82_v50, %v82_v50 }
 0x11a   :  { %87 = vst.msk [vmem:[#allocation2 + $0x4] sm:$0xf] %vm85_vm7, %v84_v51 }
 0x11b   :  { %100 = dma.vmem_to_hbm [thread:$0]  %s93_s17, 128, %s95_s2, [#allocation3], %s150_s20, %s150_s20, %s151_s21  }
 0x11c   :  { %146 = dma.done.wait [#allocation3], 128  }
 0x11d   :  { %147 = vsyncadd [#allocation3], 4294967168 }
 0x11e   :  { %105 = vsyncpa [#allocation3], 1 }

// kernel: text_encoder_forward.23
= control target key start
LH: loop header
LB: loop body
LE: loop exit
PB: predicated region body
PF: predicated region fallthrough
CT: control target
= control target key end

     0   :  { %vm24_vm0 = vcmask 254976   ;;  %s222_s0 = inlined_call_operand.vmem [shape: bf16[2,32], index: 0, kind: input, shape index: {}]   ;;  %s223_s1 = inlined_call_operand.vmem [shape: f32[1,32], index: 1, kind: input, shape index: {}]   ;;  %s224_s2 = inlined_call_operand.vmem [shape: f32[1,32], index: 2, kind: input, shape index: {}]   ;;  %s225_s3 = inlined_call_operand.vmem [shape: bf16[32,16], index: 3, kind: input, shape index: {}]   ;;  %s226_s4 = inlined_call_operand.vmem [shape: f32[1,16], index: 4, kind: input, shape index: {}]   ;;  %s227_s5 = inlined_call_operand.hbm [shape: bf16[2,16], index: 5, kind: output, shape index: {}]  }
   0x1   :  { %v22_v0 = vld [vmem:[%s222_s0] sm:$0x1] }
   0x2   :  { %v23_v1 = vunpack.c.l.bf16 %v22_v0 }
   0x3   :  { %10 = vsyncpa [#allocation3], 0  ;;  %v167_v3 = vmov 32.0   ;;  %v131_v15 = vld [vmem:[%s225_s3 + $0x8] sm:$0xff]  ;;  %v130_v16 = vld [vmem:[%s225_s3] sm:$0xff]  ;;  %vm85_vm5 = vcmask 261120  }
   0x4   :  { %v25_v2 = vsel %vm24_vm0, %v23_v1, 0.0  ;;  %137 = vrcp.f32 %v167_v3  ;;  %95 = vmatpush.bf16.msra.mxu0 %v131_v15  ;;  %v134_v26 = vld [vmem:[%s223_s1] ss:$0 sm:$0xff]  ;;  %s168_s28 = smov [#allocation2]   ;;  %s112_s6 = sshll.u32 %s227_s5, 4  ;;  %vm103_vm6 = vcmask 122880   ;;  %s113_s6 = int_to_ptr.hbm [resolvable:$true] %s112_s6 }
   0x5   :  { %26 = vadd.xlane.f32.xlu0 %v25_v2  ;;  %v135_v29 = vld [vmem:[%s224_s2] ss:$0 sm:$0xff]  ;;  %s110_s29 = sshll.u32 %s168_s28, 4  ;;  %s111_s29 = int_to_ptr.vmem [resolvable:$true] %s110_s29 }
   0x6   :  { %v136_v33 = vld [vmem:[%s226_s4] ss:$0 sm:$0xff] }
   0x8   :  { %96 = vmatpush.bf16.msra.mxu0 %v130_v16 }
   0xa   :  { %v138_v4 = vpop.eup %137 }
   0xb   :  { %v29_v5 = vmul.f32 32.0, %v138_v4  ;;  %vm33_vm1 = vweird.f32 %v138_v4 }
   0xd   :  { %v30_v6 = vsub.f32 1.0, %v29_v5 }
   0xf   :  { %v31_v7 = vmul.f32 %v138_v4, %v30_v6 }
  0x11   :  { %v32_v8 = vadd.f32 %v138_v4, %v31_v7 }
  0x13   :  { %v34_v9 = vsel %vm33_vm1, %v138_v4, %v32_v8 }
  0x78   :  { %v27_v10 = vpop.xlane.xlu0 %26 }
  0x79   :  { %v35_v11 = vmul.f32 %v34_v9, %v27_v10 }
  0x7b   :  { %v36_v12 = vsub.f32 %v23_v1, %v35_v11 }
  0x7d   :  { %v37_v13 = vmul.f32 %v36_v12, %v36_v12 }
  0x7f   :  { %v38_v14 = vsel %vm24_vm0, %v37_v13, 0.0 }
  0x80   :  { %39 = vadd.xlane.f32.xlu0 %v38_v14 }
  0xf3   :  { %v40_v17 = vpop.xlane.xlu0 %39 }
  0xf4   :  { %v41_v18 = vmul.f32 %v40_v17, %v34_v9 }
  0xf6   :  { %v42_v19 = vadd.f32 1e-05, %v41_v18 }
  0xf8   :  { %139 = vrsqrt.f32 %v42_v19  ;;  %vm49_vm3 = vweird.f32 %v42_v19 }
  0xfe   :  { %v140_v20 = vpop.eup %139 }
  0xff   :  { %v44_v21 = vmul.f32 %v140_v20, %v42_v19  ;;  %vm50_vm2 = vweird.f32 %v140_v20 }
 0x100   :  { %vm51_vm4 = vmor %vm49_vm3, %vm50_vm2 }
 0x101   :  { %v45_v22 = vmul.f32 %v140_v20, %v44_v21 }
 0x103   :  { %v46_v23 = vmul.f32 0.5, %v45_v22 }
 0x105   :  { %v47_v24 = vsub.f32 1.5, %v46_v23 }
 0x107   :  { %v48_v25 = vmul.f32 %v140_v20, %v47_v24 }
 0x109   :  { %v52_v27 = vsel %vm51_vm4, %v140_v20, %v48_v25 }
 0x10a   :  { %v53_v28 = vmul.f32 %v52_v27, %v36_v12 }
 0x10c   :  { %v58_v30 = vmul.f32 %v134_v26, %v53_v28 }
 0x10e   :  { %v63_v31 = vadd.f32 %v135_v29, %v58_v30 }
 0x110   :  { %v64_v32 = vpack.c.bf16 %v63_v31, %v63_v31 }
 0x112   :  { %129 = vmatmul.msk.bf16.vlgmr.msra.gmra.mxu0 %vm85_vm5, %v64_v32 }
 0x18f   :  { %v98_v34 = vpop.f32.mrf.mxu0 }
 0x190   :  { %v99_v35 = vadd.f32 %v136_v33, %v98_v34 }
 0x192   :  { %v102_v36 = vpack.c.bf16 %v99_v35, %v99_v35 }
 0x194   :  { %104 = vst.msk [vmem:[#allocation2] sm:$0x1] %vm103_vm6, %v102_v36 }
 0x195   :  { %115 = dma.vmem_to_hbm [thread:$0]  %s111_s29, 16, %s113_s6, [#allocation3]  }
 0x197   :  { %v100_v37 = vpop.f32.mrf.mxu0 }
 0x198   :  { %165 = dma.done.wait [#allocation3], 16  }
 0x199   :  { %166 = vsyncadd [#allocation3], 4294967280 }
 0x19a   :  { %120 = vsyncpa [#allocation3], 1 }

</bundles_post_ra>
